<compile_context>
chip_gen: v7x
topology: tpu7x:2x2x1
jax: 0.10.0
libtpu: 0.0.40
codegen_flags: <defaults>
</compile_context>

<pallas_src>
import jax
import jax.numpy as jnp
from jax.experimental import pallas as pl
from jax.experimental.pallas import tpu as pltpu

_LANES = 128


def _make_kernel(full: bool, matmul_dtype):
    """Builds the per-tile kernel (static covariance-type / operand dtype)."""

    def body(f_ref, w_ref, quad_ref, cross_ref, bk_ref, out_ref):
        tm = f_ref.shape[0]
        # Exact-precision operand for the small cross-term matmul (mixed prec).
        f_hi = f_ref[...].astype(jnp.float32)

        if full:
            # Whitening matmul -- the only place matmul_dtype (bf16) is used.
            y = jnp.dot(f_ref[...].astype(matmul_dtype), w_ref[...],
                        preferred_element_type=jnp.float32)          # [TM, D]
        else:
            # 'diagonal': the per-feature scale is folded into quad/cross, so
            # the quadratic term is rowsum(f^2 * w^2) -- no diag(W) matmul.
            y = f_hi

        # rowsum(y^2) on the MXU (dot with a [D, 1] column): keeps the lane
        # reduction off the XLU, which is the binding slot at small D.
        q = jnp.dot(y * y, quad_ref[...],
                    preferred_element_type=jnp.float32)               # [TM, 1]
        yc = jnp.dot(f_hi, cross_ref[...],
                     preferred_element_type=jnp.float32)              # [TM, K]
        d2 = q + bk_ref[...] - 2.0 * yc                               # [TM, K]
        d2min = jnp.min(d2, axis=-1, keepdims=True)                   # [TM, 1]

        # Relayout [TM, 1] -> (1, TM) lane-dense output, 128 rows at a time:
        # identity *select* (not multiply: keeps any NaN/inf produced by
        # ragged-padding rows confined to their own output lane) followed by
        # an MXU column-sum -- no XLU sublane reduce, no reshape/transpose.
        ri = jax.lax.broadcasted_iota(jnp.int32, (_LANES, _LANES), 0)
        ci = jax.lax.broadcasted_iota(jnp.int32, (_LANES, _LANES), 1)
        eye_mask = ri == ci
        ones_row = jnp.ones((1, _LANES), jnp.float32)
        for blk in range(tm // _LANES):                               # static unroll
            lo = blk * _LANES
            col = d2min[lo:lo + _LANES, :]                            # [128, 1]
            masked = jnp.where(eye_mask, col, 0.0)                    # [128, 128]
            row = jnp.dot(ones_row, masked,
                          preferred_element_type=jnp.float32)         # [1, 128]
            out_ref[:, lo:lo + _LANES] = jnp.sqrt(
                jnp.maximum(row, 0.0)).astype(out_ref.dtype)

    if full:
        def kernel(f_ref, w_ref, quad_ref, cross_ref, bk_ref, out_ref):
            body(f_ref, w_ref, quad_ref, cross_ref, bk_ref, out_ref)
    else:
        def kernel(f_ref, quad_ref, cross_ref, bk_ref, out_ref):
            body(f_ref, None, quad_ref, cross_ref, bk_ref, out_ref)
    return kernel


def _precompute(global_mean, W, mu, covariance_type, matmul_dtype):
    """Host-side, grid-invariant precompute (runs once, outside the kernel).

    Global-mean offset is folded in:
      full:     m = mu + gm@W ;  quad = ones      ; cross = W @ m^T ; w_op = W
      diagonal: m = mu + gm*w ;  quad = (w*w)^T   ; cross = (w ⊙ m)^T
      bk_k = ||m_k||^2
    """
    mu = mu.astype(jnp.float32)
    k, d = mu.shape
    gm = global_mean.astype(jnp.float32).reshape(1, d)
    if covariance_type == "diagonal":
        w = W.astype(jnp.float32).reshape(1, d)
        m = mu + gm * w                              # [K, D]
        cross = (m * w).T                            # [D, K]
        quad = (w * w).reshape(d, 1)                 # [D, 1]
        w_op = None
    else:
        w_full = W.astype(jnp.float32).reshape(d, d)
        m = mu + gm @ w_full                         # [K, D]
        cross = w_full @ m.T                         # [D, K]  (kept in f32)
        quad = jnp.ones((d, 1), jnp.float32)         # [D, 1]
        w_op = w_full.astype(matmul_dtype)
    bk = jnp.sum(m * m, axis=-1)[None, :]            # [1, K]
    return w_op, quad, cross, bk


def gaussians_forward(features, logits, global_mean, W, mu, *,
                      covariance_type="diagonal", tm=2048,
                      matmul_dtype=jnp.bfloat16):
    """Pallas TPU equivalent of Gaussians.forward (logits are unused, as in the
    PyTorch module).  Returns [N, 1] min distances to the class means."""
    del logits  # unused by Gaussians.forward, kept for API parity
    n, d = features.shape
    k = mu.shape[0]
    full = covariance_type != "diagonal"

    w_op, quad, cross, bk = _precompute(global_mean, W, mu,
                                        covariance_type, matmul_dtype)

    # ------------------------- row-tile sizing ------------------------------
    tm = max(_LANES, (tm // _LANES) * _LANES)
    n_blk = pl.cdiv(n, _LANES)
    # Keep the "parallel" grid >= 2 steps when possible so both v7x TensorCores
    # get work, and never pad tiny inputs up to the default tile.
    tm = min(tm, max(_LANES, pl.cdiv(n_blk, 2) * _LANES))
    # VMEM budget: double-buffered feature tile + output block + constants must
    # stay well under v7x's 32 MiB scoped default (64 MiB physical).
    in_bytes = jnp.dtype(features.dtype).itemsize
    const_bytes = 2 * (((d * d * jnp.dtype(matmul_dtype).itemsize) if full else 0)
                       + d * (k + 1) * 4 + k * 4)
    budget = 20 * 1024 * 1024
    while tm > _LANES and 2 * tm * (d * in_bytes + 4) + const_bytes > budget:
        tm -= _LANES
    vmem_est = 2 * tm * (d * in_bytes + 4) + const_bytes
    vmem_limit = (int(min(vmem_est + (8 << 20), 96 << 20))
                  if vmem_est > (12 << 20) else None)
    # TODO(synk): for very large D on v7x also single-buffer the grid-invariant
    # weight specs (pipeline_mode=pl.Buffered(1)) once verified on the target
    # jax build; at small D the double-buffered constants are only a few KiB.

    grid = pl.cdiv(n, tm)  # ragged trailing block handled by Pallas (no pad)

    in_arrays = [features]
    in_specs = [pl.BlockSpec((tm, d), lambda i: (i, 0))]            # feature stream
    if full:
        in_arrays.append(w_op)
        in_specs.append(pl.BlockSpec((d, d), lambda i: (0, 0)))     # W (invariant)
    in_arrays += [quad, cross, bk]
    in_specs += [pl.BlockSpec((d, 1), lambda i: (0, 0)),            # quad column
                 pl.BlockSpec((d, k), lambda i: (0, 0)),            # cross = W @ m^T
                 pl.BlockSpec((1, k), lambda i: (0, 0))]            # ||m_k||^2

    out_row = pl.pallas_call(
        _make_kernel(full, matmul_dtype),
        out_shape=jax.ShapeDtypeStruct((1, n), jnp.float32),
        grid_spec=pltpu.PrefetchScalarGridSpec(
            num_scalar_prefetch=0,
            grid=(grid,),
            in_specs=in_specs,
            out_specs=pl.BlockSpec((1, tm), lambda i: (0, i)),      # lane-dense
        ),
        compiler_params=pltpu.CompilerParams(
            dimension_semantics=("parallel",),
            vmem_limit_bytes=vmem_limit),
    )(*in_arrays)

    return out_row.reshape(n, 1)


# --------------------------- host-side fit + references ----------------------

def fit_gaussians(features, targets, num_classes, covariance_type="diagonal"):
    """Host-side setup matching Gaussians.fit (not part of the forward path)."""
    features = features.astype(jnp.float32)
    n, dim = features.shape
    global_mean = features.mean(0, keepdims=True)
    center_f = features - global_mean
    if covariance_type == "diagonal":
        W = 1.0 / jnp.std(center_f, axis=0, keepdims=True, ddof=1)
        transf_f = center_f * W
    else:
        cov = (center_f.T @ center_f) / (n - 1) + jnp.eye(dim) * 1e-6
        W = jnp.linalg.cholesky(jnp.linalg.inv(cov))
        transf_f = center_f @ W
    one_hot = (targets[:, None] == jnp.arange(num_classes)[None, :]).astype(jnp.float32)
    counts = one_hot.sum(0)
    mu = (one_hot.T @ transf_f) / counts[:, None]
    return global_mean, W, mu


def reference_forward(features, global_mean, W, mu, covariance_type="diagonal"):
    """Direct (a-b)^2 cdist form, mirroring the PyTorch module."""
    features = features.astype(jnp.float32)
    if covariance_type == "diagonal":
        transf_f = (features - global_mean) * W
    else:
        transf_f = (features - global_mean) @ W
    diff = transf_f[:, None, :] - mu[None, :, :]
    dist = jnp.sqrt(jnp.sum(diff * diff, axis=-1))
    return jnp.min(dist, axis=1, keepdims=True)


def gram_reference(features, w_op, quad, cross, bk, matmul_dtype, *, full):
    """Same mixed-precision Gram math as the kernel (validates the bf16 path)."""
    f_hi = features.astype(jnp.float32)
    if full:
        y = jnp.dot(features.astype(matmul_dtype), w_op,
                    preferred_element_type=jnp.float32)
    else:
        y = f_hi
    q = jnp.dot(y * y, quad)
    yc = jnp.dot(f_hi, cross)
    d2 = q + bk - 2.0 * yc
    return jnp.sqrt(jnp.maximum(jnp.min(d2, axis=-1, keepdims=True), 0.0))


if __name__ == "__main__":
    # Ragged N (not a multiple of the row tile) exercises the no-host-pad path.
    N, D, K = 1000, 32, 8
    key = jax.random.PRNGKey(0)
    k_mean, k_noise, k_mix, k_logits = jax.random.split(key, 4)

    class_means = 2.0 * jax.random.normal(k_mean, (K, D), dtype=jnp.float32)
    targets = jnp.arange(N, dtype=jnp.int32) % K
    mix = jnp.eye(D, dtype=jnp.float32) + 0.1 * jax.random.normal(
        k_mix, (D, D), dtype=jnp.float32)
    features = class_means[targets] + jax.random.normal(
        k_noise, (N, D), dtype=jnp.float32) @ mix
    logits = jax.random.normal(k_logits, (N, K), dtype=jnp.float32)  # unused

    # f32 MXU-operand path: check both covariance types vs. exact cdist ref.
    for cov_type in ("full", "diagonal"):
        gm, W, mu = fit_gaussians(features, targets, K, covariance_type=cov_type)
        out = gaussians_forward(features, logits, gm, W, mu,
                                covariance_type=cov_type,
                                matmul_dtype=jnp.float32)
        out = jax.block_until_ready(out)
        ref = reference_forward(features, gm, W, mu, covariance_type=cov_type)
        assert out.shape == (N, 1)
        assert bool(jnp.allclose(out, ref, atol=1e-3, rtol=1e-3)), \
            f"mismatch ({cov_type})"

    # Default bf16 MXU-operand path ('full'): tight check vs. a reference using
    # the same mixed-precision Gram math, plus a loose check vs. the exact
    # cdist reference (absolute accuracy is now asserted too).
    gm, W, mu = fit_gaussians(features, targets, K, covariance_type="full")
    out_bf16 = gaussians_forward(features, logits, gm, W, mu,
                                 covariance_type="full")  # matmul_dtype=bf16
    out_bf16 = jax.block_until_ready(out_bf16)
    w_op, quad, cross, bk = _precompute(gm, W, mu, "full", jnp.bfloat16)
    ref_mixed = gram_reference(features, w_op, quad, cross, bk, jnp.bfloat16,
                               full=True)
    ref_exact = reference_forward(features, gm, W, mu, covariance_type="full")
    assert bool(jnp.allclose(out_bf16, ref_mixed, atol=2e-2, rtol=2e-2)), \
        "bf16 mismatch vs mixed-precision reference"
    assert bool(jnp.allclose(out_bf16, ref_exact, atol=0.5, rtol=5e-2)), \
        "bf16 mismatch vs exact cdist reference"

    print("KERNEL_OK")
</pallas_src>

<mosaic_0001>
module attributes {stable_mosaic.version = 11 : i64} {
  func.func @kernel(%arg0: i32, %arg1: memref<512x32xf32, #tpu.memory_space<vmem>>, %arg2: memref<32x32xf32, #tpu.memory_space<vmem>>, %arg3: memref<32x1xf32, #tpu.memory_space<vmem>>, %arg4: memref<32x8xf32, #tpu.memory_space<vmem>>, %arg5: memref<1x8xf32, #tpu.memory_space<vmem>>, %arg6: memref<1x512xf32, #tpu.memory_space<vmem>>) attributes {dimension_semantics = [#tpu.dimension_semantics<parallel>], iteration_bounds = array<i64: 2>, scalar_prefetch = 0 : i64, scratch_operands = 0 : i64, tpu.core_type = #tpu.core_type<tc>, window_params = [{transform_indices = @transform_0, window_bounds = array<i64: 512, 32>}, {pipeline_mode = #tpu.pipeline_mode<synchronous>, transform_indices = @transform_1, window_bounds = array<i64: 32, 32>}, {pipeline_mode = #tpu.pipeline_mode<synchronous>, transform_indices = @transform_2, window_bounds = array<i64: 32, 1>}, {pipeline_mode = #tpu.pipeline_mode<synchronous>, transform_indices = @transform_3, window_bounds = array<i64: 32, 8>}, {pipeline_mode = #tpu.pipeline_mode<synchronous>, transform_indices = @transform_4, window_bounds = array<i64: 1, 8>}, {transform_indices = @transform_5, window_bounds = array<i64: 1, 512>}]} {
    %c0 = arith.constant 0 : index
    %c0_0 = arith.constant 0 : index
    %0 = vector.load %arg1[%c0, %c0_0] : memref<512x32xf32, #tpu.memory_space<vmem>>, vector<512x32xf32>
    %c0_1 = arith.constant 0 : index
    %c0_2 = arith.constant 0 : index
    %1 = vector.load %arg1[%c0_1, %c0_2] : memref<512x32xf32, #tpu.memory_space<vmem>>, vector<512x32xf32>
    %c0_3 = arith.constant 0 : index
    %c0_4 = arith.constant 0 : index
    %2 = vector.load %arg2[%c0_3, %c0_4] : memref<32x32xf32, #tpu.memory_space<vmem>>, vector<32x32xf32>
    %cst = arith.constant dense<0.000000e+00> : vector<512x32xf32>
    %3 = tpu.matmul %1, %2, %cst {dimension_numbers = #tpu.dot_dimension_numbers<[1], [0], [0], [1], [0, 0, 1, 1], [], []>} : vector<512x32xf32>, vector<32x32xf32>, vector<512x32xf32> -> vector<512x32xf32>
    %4 = arith.mulf %3, %3 : vector<512x32xf32>
    %c0_5 = arith.constant 0 : index
    %c0_6 = arith.constant 0 : index
    %5 = vector.load %arg3[%c0_5, %c0_6] : memref<32x1xf32, #tpu.memory_space<vmem>>, vector<32x1xf32>
    %cst_7 = arith.constant dense<0.000000e+00> : vector<512x1xf32>
    %6 = tpu.matmul %4, %5, %cst_7 {dimension_numbers = #tpu.dot_dimension_numbers<[1], [0], [0], [1], [0, 0, 1, 1], [], []>} : vector<512x32xf32>, vector<32x1xf32>, vector<512x1xf32> -> vector<512x1xf32>
    %c0_8 = arith.constant 0 : index
    %c0_9 = arith.constant 0 : index
    %7 = vector.load %arg4[%c0_8, %c0_9] : memref<32x8xf32, #tpu.memory_space<vmem>>, vector<32x8xf32>
    %cst_10 = arith.constant dense<0.000000e+00> : vector<512x8xf32>
    %8 = tpu.matmul %0, %7, %cst_10 {dimension_numbers = #tpu.dot_dimension_numbers<[1], [0], [0], [1], [0, 0, 1, 1], [], []>} : vector<512x32xf32>, vector<32x8xf32>, vector<512x8xf32> -> vector<512x8xf32>
    %c0_11 = arith.constant 0 : index
    %c0_12 = arith.constant 0 : index
    %9 = vector.load %arg5[%c0_11, %c0_12] : memref<1x8xf32, #tpu.memory_space<vmem>>, vector<1x8xf32>
    %10 = vector.broadcast %6 : vector<512x1xf32> to vector<512x8xf32>
    %11 = vector.broadcast %9 : vector<1x8xf32> to vector<512x8xf32>
    %12 = arith.addf %10, %11 : vector<512x8xf32>
    %cst_13 = arith.constant 2.000000e+00 : f32
    %13 = vector.broadcast %cst_13 : f32 to vector<512x8xf32>
    %14 = arith.mulf %13, %8 : vector<512x8xf32>
    %15 = arith.subf %12, %14 : vector<512x8xf32>
    %cst_14 = arith.constant dense<0x7F800000> : vector<512xf32>
    %16 = vector.multi_reduction <minimumf>, %15, %cst_14 [1] : vector<512x8xf32> to vector<512xf32>
    %17 = vector.shape_cast %16 : vector<512xf32> to vector<512x1xf32>
    %18 = tpu.iota {dimensions = array<i32: 0>} : vector<128x128xi32>
    %19 = tpu.iota {dimensions = array<i32: 1>} : vector<128x128xi32>
    %20 = arith.cmpi eq, %18, %19 : vector<128x128xi32>
    %cst_15 = arith.constant 1.000000e+00 : f32
    %21 = vector.broadcast %cst_15 : f32 to vector<1x128xf32>
    %22 = vector.extract_strided_slice %17 {offsets = [0, 0], sizes = [128, 1], strides = [1, 1]} : vector<512x1xf32> to vector<128x1xf32>
    %cst_16 = arith.constant 0.000000e+00 : f32
    %23 = vector.shape_cast %22 : vector<128x1xf32> to vector<128x1xf32>
    %24 = vector.broadcast %23 : vector<128x1xf32> to vector<128x128xf32>
    %25 = vector.broadcast %cst_16 : f32 to vector<128x128xf32>
    %26 = arith.select %20, %24, %25 : vector<128x128xi1>, vector<128x128xf32>
    %cst_17 = arith.constant dense<0.000000e+00> : vector<1x128xf32>
    %27 = tpu.matmul %21, %26, %cst_17 {dimension_numbers = #tpu.dot_dimension_numbers<[1], [0], [0], [1], [0, 0, 1, 1], [], []>} : vector<1x128xf32>, vector<128x128xf32>, vector<1x128xf32> -> vector<1x128xf32>
    %cst_18 = arith.constant 0.000000e+00 : f32
    %28 = vector.broadcast %cst_18 : f32 to vector<1x128xf32>
    %29 = arith.maximumf %27, %28 : vector<1x128xf32>
    %30 = math.sqrt %29 : vector<1x128xf32>
    %c0_19 = arith.constant 0 : index
    %c0_20 = arith.constant 0 : index
    %31 = vector.load %arg6[%c0_19, %c0_20] : memref<1x512xf32, #tpu.memory_space<vmem>>, vector<1x128xf32>
    tpu.vector_store %arg6[%c0_19, %c0_20], %30 {strides = array<i32>} : memref<1x512xf32, #tpu.memory_space<vmem>>, vector<1x128xf32>,
    %32 = vector.extract_strided_slice %17 {offsets = [128, 0], sizes = [128, 1], strides = [1, 1]} : vector<512x1xf32> to vector<128x1xf32>
    %cst_21 = arith.constant 0.000000e+00 : f32
    %33 = vector.shape_cast %32 : vector<128x1xf32> to vector<128x1xf32>
    %34 = vector.broadcast %33 : vector<128x1xf32> to vector<128x128xf32>
    %35 = vector.broadcast %cst_21 : f32 to vector<128x128xf32>
    %36 = arith.select %20, %34, %35 : vector<128x128xi1>, vector<128x128xf32>
    %cst_22 = arith.constant dense<0.000000e+00> : vector<1x128xf32>
    %37 = tpu.matmul %21, %36, %cst_22 {dimension_numbers = #tpu.dot_dimension_numbers<[1], [0], [0], [1], [0, 0, 1, 1], [], []>} : vector<1x128xf32>, vector<128x128xf32>, vector<1x128xf32> -> vector<1x128xf32>
    %cst_23 = arith.constant 0.000000e+00 : f32
    %38 = vector.broadcast %cst_23 : f32 to vector<1x128xf32>
    %39 = arith.maximumf %37, %38 : vector<1x128xf32>
    %40 = math.sqrt %39 : vector<1x128xf32>
    %c0_24 = arith.constant 0 : index
    %c128 = arith.constant 128 : index
    %41 = vector.load %arg6[%c0_24, %c128] : memref<1x512xf32, #tpu.memory_space<vmem>>, vector<1x128xf32>
    tpu.vector_store %arg6[%c0_24, %c128], %40 {strides = array<i32>} : memref<1x512xf32, #tpu.memory_space<vmem>>, vector<1x128xf32>,
    %42 = vector.extract_strided_slice %17 {offsets = [256, 0], sizes = [128, 1], strides = [1, 1]} : vector<512x1xf32> to vector<128x1xf32>
    %cst_25 = arith.constant 0.000000e+00 : f32
    %43 = vector.shape_cast %42 : vector<128x1xf32> to vector<128x1xf32>
    %44 = vector.broadcast %43 : vector<128x1xf32> to vector<128x128xf32>
    %45 = vector.broadcast %cst_25 : f32 to vector<128x128xf32>
    %46 = arith.select %20, %44, %45 : vector<128x128xi1>, vector<128x128xf32>
    %cst_26 = arith.constant dense<0.000000e+00> : vector<1x128xf32>
    %47 = tpu.matmul %21, %46, %cst_26 {dimension_numbers = #tpu.dot_dimension_numbers<[1], [0], [0], [1], [0, 0, 1, 1], [], []>} : vector<1x128xf32>, vector<128x128xf32>, vector<1x128xf32> -> vector<1x128xf32>
    %cst_27 = arith.constant 0.000000e+00 : f32
    %48 = vector.broadcast %cst_27 : f32 to vector<1x128xf32>
    %49 = arith.maximumf %47, %48 : vector<1x128xf32>
    %50 = math.sqrt %49 : vector<1x128xf32>
    %c0_28 = arith.constant 0 : index
    %c256 = arith.constant 256 : index
    %51 = vector.load %arg6[%c0_28, %c256] : memref<1x512xf32, #tpu.memory_space<vmem>>, vector<1x128xf32>
    tpu.vector_store %arg6[%c0_28, %c256], %50 {strides = array<i32>} : memref<1x512xf32, #tpu.memory_space<vmem>>, vector<1x128xf32>,
    %52 = vector.extract_strided_slice %17 {offsets = [384, 0], sizes = [128, 1], strides = [1, 1]} : vector<512x1xf32> to vector<128x1xf32>
    %cst_29 = arith.constant 0.000000e+00 : f32
    %53 = vector.shape_cast %52 : vector<128x1xf32> to vector<128x1xf32>
    %54 = vector.broadcast %53 : vector<128x1xf32> to vector<128x128xf32>
    %55 = vector.broadcast %cst_29 : f32 to vector<128x128xf32>
    %56 = arith.select %20, %54, %55 : vector<128x128xi1>, vector<128x128xf32>
    %cst_30 = arith.constant dense<0.000000e+00> : vector<1x128xf32>
    %57 = tpu.matmul %21, %56, %cst_30 {dimension_numbers = #tpu.dot_dimension_numbers<[1], [0], [0], [1], [0, 0, 1, 1], [], []>} : vector<1x128xf32>, vector<128x128xf32>, vector<1x128xf32> -> vector<1x128xf32>
    %cst_31 = arith.constant 0.000000e+00 : f32
    %58 = vector.broadcast %cst_31 : f32 to vector<1x128xf32>
    %59 = arith.maximumf %57, %58 : vector<1x128xf32>
    %60 = math.sqrt %59 : vector<1x128xf32>
    %c0_32 = arith.constant 0 : index
    %c384 = arith.constant 384 : index
    %61 = vector.load %arg6[%c0_32, %c384] : memref<1x512xf32, #tpu.memory_space<vmem>>, vector<1x128xf32>
    tpu.vector_store %arg6[%c0_32, %c384], %60 {strides = array<i32>} : memref<1x512xf32, #tpu.memory_space<vmem>>, vector<1x128xf32>,
    return
  }
  func.func @transform_0(%arg0: i32) -> (i32, i32) {
    %c0_i32 = arith.constant 0 : i32
    %c0_i32_0 = arith.constant 0 : i32
    return %arg0, %c0_i32 : i32, i32
  }
  func.func @transform_1(%arg0: i32) -> (i32, i32) {
    %c0_i32 = arith.constant 0 : i32
    %c0_i32_0 = arith.constant 0 : i32
    %c0_i32_1 = arith.constant 0 : i32
    return %c0_i32, %c0_i32_0 : i32, i32
  }
  func.func @transform_2(%arg0: i32) -> (i32, i32) {
    %c0_i32 = arith.constant 0 : i32
    %c0_i32_0 = arith.constant 0 : i32
    %c0_i32_1 = arith.constant 0 : i32
    return %c0_i32, %c0_i32_0 : i32, i32
  }
  func.func @transform_3(%arg0: i32) -> (i32, i32) {
    %c0_i32 = arith.constant 0 : i32
    %c0_i32_0 = arith.constant 0 : i32
    %c0_i32_1 = arith.constant 0 : i32
    return %c0_i32, %c0_i32_0 : i32, i32
  }
  func.func @transform_4(%arg0: i32) -> (i32, i32) {
    %c0_i32 = arith.constant 0 : i32
    %c0_i32_0 = arith.constant 0 : i32
    %c0_i32_1 = arith.constant 0 : i32
    return %c0_i32, %c0_i32_0 : i32, i32
  }
  func.func @transform_5(%arg0: i32) -> (i32, i32) {
    %c0_i32 = arith.constant 0 : i32
    %c0_i32_0 = arith.constant 0 : i32
    return %c0_i32, %arg0 : i32, i32
  }
}

</mosaic_0001>

<bundles_post_ra>
// kernel: tpu_custom_call.1
= control target key start
LH: loop header
LB: loop body
LE: loop exit
PB: predicated region body
PF: predicated region fallthrough
CT: control target
= control target key end

     0   :  { %10 = vsyncpa [#allocation3], 0  ;;  %s5783_s0 = inlined_call_operand.vmem [shape: f32[1000,32], index: 0, kind: input, shape index: {}]   ;;  %s5784_s1 = inlined_call_operand.vmem [shape: f32[32,32], index: 1, kind: input, shape index: {}]   ;;  %s5785_s2 = inlined_call_operand.vmem [shape: f32[32,1], index: 2, kind: input, shape index: {}]   ;;  %s5786_s3 = inlined_call_operand.vmem [shape: f32[32,8], index: 3, kind: input, shape index: {}]   ;;  %s5787_s4 = inlined_call_operand.vmem [shape: f32[1,8], index: 4, kind: input, shape index: {}]   ;;  %s5788_s5 = inlined_call_operand.hbm [shape: f32[1,1000], index: 5, kind: output, shape index: {}]  }
   0x1   :  { %12 = vsyncpa [#allocation3 + $0x1], 0  ;;  %s4436_s18 = smov 0   ;;  %s4438_s19 = smov 0  }
   0x2   :  { %s4440_s20 = smov 0   ;;  %s4442_s21 = smov 0  }
   0x3 LB: > { %s3130_s22 = sadd.s32 4294967295, %s4398_s21   ;;  %s3131_s23 = sadd.s32 4294967294, %s4398_s21   ;;  %s4398_s21 = sphi %s4442_s21, %s5880_s21   ;;  %s4394_s20 = sphi %s4440_s20, %s5879_s20   ;;  %s4390_s19 = sphi %s4438_s19, %s5878_s19   ;;  %s4386_s18 = sphi %s4436_s18, %s5877_s18  }
   0x4   : > { %s4459_s24 = sadd.s32 1, %s4398_s21   ;;  %s135_s25 = sadd.s32 1, %s4394_s20 }
   0x5   : > { %s132_s26 = ssub.s32 %s4398_s21, %s4459_s24  ;;  %p145_p0 = scmp.ne.s32.totalorder %s4394_s20, %s4390_s19 }
   0x6   : > { %p133_p1 = scmp.eq.s32.totalorder %s132_s26, 0  ;;  %p146_p2 = scmp.eq.s32.totalorder %s3130_s22, 1 }
   0x7   : > { %p151_p3 = scmp.ne.s32.totalorder %s4390_s19, %s4386_s18  ;;  %p152_p4 = scmp.eq.s32.totalorder %s3131_s23, 1 }
   0x8   : > { %s4469_s27 = scalar_select %p133_p1, %s4394_s20, %s135_s25  }
   0x9   : > { %p4471_p5 = por %p146_p2, %p145_p0  ;;  %p4475_p6 = por %p152_p4, %p151_p3 }
   0xa   : > { %p3134_p7 = scmp.ge.s32.totalorder %s4398_s21, 1  ;;  %p199_p8 = scmp.lt.s32.totalorder %s4398_s21, 3 }
   0xc   : > { %p200_p9 = pnand %p3134_p7, %p199_p8 }
   0xe   : > { %203 = sbr.rel (%p200_p9) target bundleno = 1258 (0x4ea), region = 40 }
  0x15   : > { %v310_v0 = vld [vmem:[%s5784_s1] sm:$0xff]  ;;  %v311_v1 = vld [vmem:[%s5784_s1 + $0x8] sm:$0xff]  ;;  %v312_v2 = vld [vmem:[%s5784_s1 + $0x10] sm:$0xff]  ;;  %s4490_s11 = sshll.u32 %s3130_s22, 6  ;;  %vm314_vm0 = vcmask 261120   ;;  %vm2445_vm1 = vcmask 64512  }
  0x16   : > { %v4125_v3 = vpack.c.bf16 %v311_v1, %v310_v0  ;;  %v313_v4 = vld [vmem:[%s5784_s1 + $0x18] sm:$0xff]  ;;  %p236_p10 = scmp.lt.s32.totalorder %s4490_s11, 124  ;;  %v956_v6 = vld [vmem:[%s5785_s2] sm:$0xff]  ;;  %v957_v7 = vld [vmem:[%s5785_s2 + $0x8] sm:$0xff]  ;;  %vm4402_vm2 = vmmov 0   ;;  %s228_s6 = sand.u32 1, %s4390_s19  }
  0x17   : > { %v4129_v5 = vpack.c.bf16 %v313_v4, %v312_v2  ;;  %v4133_v8 = vpack.c.bf16 %v957_v7, %v956_v6  ;;  %v958_v18 = vld [vmem:[%s5785_s2 + $0x10] sm:$0xff]  ;;  %v959_v19 = vld [vmem:[%s5785_s2 + $0x18] sm:$0xff]  ;;  %s3135_s7 = sshll.u32 %s228_s6, 2  ;;  %s5736_s13 = scalar_lea.hbm %s5788_s5, %s4490_s11 }
  0x18   : > { %4126 = vmatprep.subr.bf16.mxu0 %v4125_v3  ;;  %s237_s14 = scalar_select %p236_p10, %s4490_s11, 124  ;;  %4277 = vmatprep.subr.bf16.mxu1 %v4125_v3  ;;  %v4137_v24 = vpack.c.bf16 %v959_v19, %v958_v18  ;;  %v1537_v18 = vld [vmem:[%s5786_s3] sm:$0xff]  ;;  %v1538_v19 = vld [vmem:[%s5786_s3 + $0x8] sm:$0xff] }
  0x19   : > { %4128 = vmatpush3.bf16.msra.mxu0 %v4125_v3  ;;  %4279 = vmatpush3.bf16.msra.mxu1 %v4125_v3  ;;  %s5716_s8 = scalar_lea.vmem [#allocation2], %s3135_s7  ;;  %s4405_s16 = smov [#allocation2]  }
  0x1a   : > { %4130 = vmatprep.subr.bf16.mxu0 %v4129_v5  ;;  %s3137_s22 = sshll.u32 %s237_s14, 3  ;;  %4278 = vmatprep.subr.bf16.mxu1 %v4129_v5  ;;  %s3072_s9 = sshll.u32 %s5716_s8, 4  ;;  %s5738_s9 = int_to_ptr.vmem [resolvable:$true] %s3072_s9 }
  0x1b   : > { %s4506_s30 = scalar_lea.vmem %s5783_s0, %s3137_s22  ;;  %s3058_s14 = scalar_lea.sflag [#allocation3], %s228_s6 }
  0x1c   : > { %v4509_v9 = vld [vmem:[%s4506_s30] sm:$0xff]  ;;  %v4514_v10 = vld [vmem:[%s4506_s30 + $0x8] sm:$0xff]  ;;  %v4517_v11 = vld [vmem:[%s4506_s30 + $0x10] sm:$0xff]  ;;  %s4336_s15 = scalar_lea.vmem %s5738_s9, 64  ;;  %s4340_s17 = sshll.u32 %s4405_s16, 4  ;;  %s4341_s17 = int_to_ptr.vmem [resolvable:$false] %s4340_s17 }
  0x1d   : > { %4132 = vmatpush3.bf16.msra.mxu0 %v4129_v5  ;;  %3681 = vmatprep.mubr.msk.f32.mxu0 %vm314_vm0, %v4509_v9  ;;  %v4524_v12 = vld [vmem:[%s4506_s30 + $0x18] sm:$0xff]  ;;  %v4527_v13 = vld [vmem:[%s4506_s30 + $0x20] sm:$0xff]  ;;  %v4534_v14 = vld [vmem:[%s4506_s30 + $0x28] sm:$0xff]  ;;  %p4337_p11 = scmp.ne.s32.totalorder %s5738_s9, %s4336_s15  ;;  %s4342_s11 = scalar_lea.vmem %s4341_s17, 128 }
  0x1e   : > { %4280 = vmatpush3.bf16.msra.mxu1 %v4129_v5  ;;  %v4537_v15 = vld [vmem:[%s4506_s30 + $0x30] sm:$0xff]  ;;  %v4544_v16 = vld [vmem:[%s4506_s30 + $0x38] sm:$0xff]  ;;  %v4547_v17 = vld [vmem:[%s4506_s30 + $0x40] sm:$0xff]  ;;  %p4343_p0 = scmp.lt.s32.totalorder %s5738_s9, %s4341_s17  ;;  %p4344_p1 = scmp.lt.s32.totalorder %s4342_s11, %s4336_s15 }
  0x1f   : > { %4134 = vmatprep.subr.bf16.mxu1 %v4133_v8  ;;  %v4560_v20 = vld [vmem:[%s4506_s30 + $0x48] sm:$0xff]  ;;  %v4563_v21 = vld [vmem:[%s4506_s30 + $0x50] sm:$0xff]  ;;  %v4569_v23 = vld [vmem:[%s4506_s30 + $0x1d8] sm:$0xff]  ;;  %p4338_p12 = pnand %p4337_p11, %p4471_p5 }
  0x20   : > { %3682 = vmatmul.mubr.msk.f32.vlgmr.msra.gmra.mrb[0].mxu0 %vm314_vm0, %v4514_v10  ;;  %v4566_v22 = vld [vmem:[%s4506_s30 + $0x1d0] sm:$0xff]  ;;  %v4576_v25 = vld [vmem:[%s4506_s30 + $0x1e0] sm:$0xff]  ;;  %v4581_v26 = vld [vmem:[%s4506_s30 + $0x58] sm:$0xff]  ;;  %p4345_p2 = por %p4344_p1, %p4343_p0 }
  0x21   : > { %3684 = vmatprep.mubr.msk.f32.mxu0 %vm314_vm0, %v4517_v11  ;;  %3768 = vmatprep.mubr.msk.f32.mxu1 %vm314_vm0, %v4566_v22  ;;  %5800 = vst [vmem:[#allocation5_spill] sm:$0xff] %v4576_v25  ;;  %v4586_v27 = vld [vmem:[%s4506_s30 + $0x60] sm:$0xff]  ;;  %v4591_v28 = vld [vmem:[%s4506_s30 + $0x1e8] sm:$0xff]  ;;  %v4594_v29 = vld [vmem:[%s4506_s30 + $0x1f0] sm:$0xff]  ;;  %p4339_p13 = pneg %p4338_p12 }
  0x22   : > { %3769 = vmatmul.mubr.msk.f32.vlgmr.msra.gmra.mrb[0].mxu1 %vm314_vm0, %v4569_v23  ;;  %5801 = vst [vmem:[#allocation6_spill] sm:$0xff] %v4591_v28  ;;  %5802 = vst [vmem:[#allocation7_spill] sm:$0xff] %v4594_v29  ;;  %v4601_v30 = vld [vmem:[%s4506_s30 + $0x68] sm:$0xff]  ;;  %v4606_v31 = vld [vmem:[%s4506_s30 + $0x70] sm:$0xff] }
  0x23   : > { %3771 = vmatprep.mubr.msk.f32.mxu1 %vm314_vm0, %v4576_v25  ;;  %4136 = vmatpush3.bf16.msra.mxu1 %v4133_v8  ;;  %v4611_v32 = vld [vmem:[%s4506_s30 + $0x1f8] sm:$0xff]  ;;  %v4623_v34 = vld [vmem:[%s4506_s30 + $0x80] sm:$0xff]  ;;  %v4630_v35 = vld [vmem:[%s4506_s30 + $0x88] sm:$0xff]  ;;  %p4346_p3 = pnand %p4345_p2, %p4339_p13 }
  0x24   : > { %3685 = vmatmul.mubr.msk.f32.gmra.mrb[2].mxu0 %vm314_vm0, %v4524_v12  ;;  %4138 = vmatprep.subr.bf16.mxu1 %v4137_v24  ;;  %5803 = vst [vmem:[#allocation8_spill] sm:$0xff] %v4611_v32  ;;  %v4618_v33 = vld [vmem:[%s4506_s30 + $0x78] sm:$0xff]  ;;  %v4633_v36 = vld [vmem:[%s4506_s30 + $0x90] sm:$0xff]  ;;  %v4643_v38 = vld [vmem:[%s4506_s30 + $0xa0] sm:$0xff] }
  0x25   : > { %3687 = vmatprep.mubr.msk.f32.mxu0 %vm314_vm0, %v4527_v13  ;;  %v4640_v37 = vld [vmem:[%s4506_s30 + $0x98] sm:$0xff]  ;;  %v4650_v39 = vld [vmem:[%s4506_s30 + $0xa8] sm:$0xff]  ;;  %v4653_v40 = vld [vmem:[%s4506_s30 + $0xb0] sm:$0xff] }
  0x26   : > { %3772 = vmatmul.mubr.msk.f32.gmra.mrb[2].mxu1 %vm314_vm0, %v4591_v28  ;;  %v4660_v41 = vld [vmem:[%s4506_s30 + $0xb8] sm:$0xff]  ;;  %v4663_v42 = vld [vmem:[%s4506_s30 + $0xc0] sm:$0xff]  ;;  %v4670_v43 = vld [vmem:[%s4506_s30 + $0xc8] sm:$0xff] }
  0x27   : > { %3774 = vmatprep.mubr.msk.f32.mxu1 %vm314_vm0, %v4594_v29  ;;  %4140 = vmatpush3.bf16.msra.mxu1 %v4137_v24  ;;  %v4673_v44 = vld [vmem:[%s4506_s30 + $0xd0] sm:$0xff]  ;;  %v4680_v45 = vld [vmem:[%s4506_s30 + $0xd8] sm:$0xff]  ;;  %v4683_v46 = vld [vmem:[%s4506_s30 + $0xe0] sm:$0xff] }
  0x28   : > { %3688 = vmatmul.mubr.msk.f32.gmra.mrb[4].mxu0 %vm314_vm0, %v4534_v14  ;;  %v4690_v47 = vld [vmem:[%s4506_s30 + $0xe8] sm:$0xff]  ;;  %v4693_v48 = vld [vmem:[%s4506_s30 + $0xf0] sm:$0xff]  ;;  %v4700_v49 = vld [vmem:[%s4506_s30 + $0xf8] sm:$0xff] }
  0x29   : > { %3690 = vmatprep.mubr.msk.f32.mxu0 %vm314_vm0, %v4537_v15  ;;  %v4703_v50 = vld [vmem:[%s4506_s30 + $0x100] sm:$0xff]  ;;  %v4710_v51 = vld [vmem:[%s4506_s30 + $0x108] sm:$0xff]  ;;  %v4713_v52 = vld [vmem:[%s4506_s30 + $0x110] sm:$0xff] }
  0x2a   : > { %3775 = vmatmul.mubr.msk.f32.gmra.mrb[4].mxu1 %vm314_vm0, %v4611_v32  ;;  %v4720_v53 = vld [vmem:[%s4506_s30 + $0x118] sm:$0xff]  ;;  %v4723_v54 = vld [vmem:[%s4506_s30 + $0x120] sm:$0xff]  ;;  %v4730_v55 = vld [vmem:[%s4506_s30 + $0x128] sm:$0xff]  ;;  %v4141_v32 = vpack.c.bf16 %v1538_v19, %v1537_v18 }
  0x2b   : > { %v4733_v56 = vld [vmem:[%s4506_s30 + $0x130] sm:$0xff]  ;;  %v4740_v57 = vld [vmem:[%s4506_s30 + $0x138] sm:$0xff]  ;;  %v4743_v58 = vld [vmem:[%s4506_s30 + $0x140] sm:$0xff] }
  0x2c   : > { %3691 = vmatmul.mubr.msk.f32.gmra.mrb[6].mxu0 %vm314_vm0, %v4544_v16  ;;  %v4750_v59 = vld [vmem:[%s4506_s30 + $0x148] sm:$0xff]  ;;  %v4753_v60 = vld [vmem:[%s4506_s30 + $0x150] sm:$0xff]  ;;  %v4760_v61 = vld [vmem:[%s4506_s30 + $0x158] sm:$0xff]  ;;  %4142 = vmatprep.subr.bf16.mxu0 %v4141_v32 }
  0x2d   : > { %3693 = vmatprep.mubr.msk.f32.mxu0 %vm314_vm0, %v4547_v17  ;;  %v4763_v62 = vld [vmem:[%s4506_s30 + $0x160] sm:$0xff]  ;;  %v4770_v63 = vld [vmem:[%s4506_s30 + $0x168] sm:$0xff]  ;;  %v4773_v0 = vld [vmem:[%s4506_s30 + $0x170] sm:$0xff]  ;;  %4144 = vmatpush3.bf16.msra.mxu0 %v4141_v32 }
  0x2e   : > { %v4780_v1 = vld [vmem:[%s4506_s30 + $0x178] sm:$0xff]  ;;  %v4783_v2 = vld [vmem:[%s4506_s30 + $0x180] sm:$0xff]  ;;  %v4790_v3 = vld [vmem:[%s4506_s30 + $0x188] sm:$0xff] }
  0x2f   : > { %v4793_v4 = vld [vmem:[%s4506_s30 + $0x190] sm:$0xff]  ;;  %v4800_v5 = vld [vmem:[%s4506_s30 + $0x198] sm:$0xff]  ;;  %v4803_v6 = vld [vmem:[%s4506_s30 + $0x1a0] sm:$0xff] }
  0x30   : > { %3694 = vmatmul.mubr.msk.f32.gmra.mrb[8].mxu0 %vm314_vm0, %v4560_v20  ;;  %v4810_v7 = vld [vmem:[%s4506_s30 + $0x1a8] sm:$0xff]  ;;  %v4813_v8 = vld [vmem:[%s4506_s30 + $0x1b0] sm:$0xff]  ;;  %v4826_v24 = vld [vmem:[%s4506_s30 + $0x1b8] sm:$0xff] }
  0x31   : > { %3696 = vmatprep.mubr.msk.f32.mxu0 %vm314_vm0, %v4563_v21  ;;  %v4829_v29 = vld [vmem:[%s4506_s30 + $0x1c0] sm:$0xff]  ;;  %v4836_v28 = vld [vmem:[%s4506_s30 + $0x1c8] sm:$0xff]  ;;  %v1539_v18 = vld [vmem:[%s5786_s3 + $0x10] sm:$0xff] }
  0x32   : > { %v1540_v19 = vld [vmem:[%s5786_s3 + $0x18] sm:$0xff] }
  0x33   : > { %v4145_v25 = vpack.c.bf16 %v1540_v19, %v1539_v18 }
  0x34   : > { %3697 = vmatmul.mubr.msk.f32.gmra.mrb[10].mxu0 %vm314_vm0, %v4581_v26 }
  0x35   : > { %3699 = vmatprep.mubr.msk.f32.mxu0 %vm314_vm0, %v4586_v27  ;;  %4146 = vmatprep.subr.bf16.mxu0 %v4145_v25 }
  0x36   : > { %4148 = vmatpush3.bf16.msra.mxu0 %v4145_v25 }
  0x38   : > { %3700 = vmatmul.mubr.msk.f32.gmra.mrb[12].mxu0 %vm314_vm0, %v4601_v30 }
  0x39   : > { %3702 = vmatprep.mubr.msk.f32.mxu0 %vm314_vm0, %v4606_v31 }
  0x3c   : > { %3703 = vmatmul.mubr.msk.f32.gmra.mrb[14].mxu0 %vm314_vm0, %v4618_v33 }
  0x3d   : > { %3705 = vmatprep.mubr.msk.f32.mxu0 %vm314_vm0, %v4623_v34 }
  0x40   : > { %3706 = vmatmul.mubr.msk.f32.gmra.mrb[16].mxu0 %vm314_vm0, %v4630_v35 }
  0x41   : > { %3708 = vmatprep.mubr.msk.f32.mxu0 %vm314_vm0, %v4633_v36 }
  0x44   : > { %3709 = vmatmul.mubr.msk.f32.gmra.mrb[18].mxu0 %vm314_vm0, %v4640_v37 }
  0x45   : > { %3711 = vmatprep.mubr.msk.f32.mxu0 %vm314_vm0, %v4643_v38 }
  0x48   : > { %3712 = vmatmul.mubr.msk.f32.gmra.mrb[20].mxu0 %vm314_vm0, %v4650_v39 }
  0x49   : > { %3714 = vmatprep.mubr.msk.f32.mxu0 %vm314_vm0, %v4653_v40 }
  0x4c   : > { %3715 = vmatmul.mubr.msk.f32.gmra.mrb[22].mxu0 %vm314_vm0, %v4660_v41 }
  0x4d   : > { %3717 = vmatprep.mubr.msk.f32.mxu0 %vm314_vm0, %v4663_v42 }
  0x50   : > { %3718 = vmatmul.mubr.msk.f32.gmra.mrb[24].mxu0 %vm314_vm0, %v4670_v43 }
  0x51   : > { %3720 = vmatprep.mubr.msk.f32.mxu0 %vm314_vm0, %v4673_v44 }
  0x54   : > { %3721 = vmatmul.mubr.msk.f32.gmra.mrb[26].mxu0 %vm314_vm0, %v4680_v45 }
  0x55   : > { %3723 = vmatprep.mubr.msk.f32.mxu0 %vm314_vm0, %v4683_v46 }
  0x58   : > { %3724 = vmatmul.mubr.msk.f32.gmra.mrb[28].mxu0 %vm314_vm0, %v4690_v47 }
  0x59   : > { %3726 = vmatprep.mubr.msk.f32.mxu0 %vm314_vm0, %v4693_v48 }
  0x5c   : > { %3727 = vmatmul.mubr.msk.f32.gmra.mrb[30].mxu0 %vm314_vm0, %v4700_v49 }
  0x5d   : > { %3729 = vmatprep.mubr.msk.f32.mxu0 %vm314_vm0, %v4703_v50 }
  0x60   : > { %3730 = vmatmul.mubr.msk.f32.gmra.mrb[32].mxu0 %vm314_vm0, %v4710_v51 }
  0x61   : > { %3732 = vmatprep.mubr.msk.f32.mxu0 %vm314_vm0, %v4713_v52 }
  0x64   : > { %3733 = vmatmul.mubr.msk.f32.gmra.mrb[34].mxu0 %vm314_vm0, %v4720_v53 }
  0x65   : > { %3735 = vmatprep.mubr.msk.f32.mxu0 %vm314_vm0, %v4723_v54 }
  0x68   : > { %3736 = vmatmul.mubr.msk.f32.gmra.mrb[36].mxu0 %vm314_vm0, %v4730_v55 }
  0x69   : > { %3738 = vmatprep.mubr.msk.f32.mxu0 %vm314_vm0, %v4733_v56 }
  0x6c   : > { %3739 = vmatmul.mubr.msk.f32.gmra.mrb[38].mxu0 %vm314_vm0, %v4740_v57 }
  0x6d   : > { %3741 = vmatprep.mubr.msk.f32.mxu0 %vm314_vm0, %v4743_v58 }
  0x70   : > { %3742 = vmatmul.mubr.msk.f32.gmra.mrb[40].mxu0 %vm314_vm0, %v4750_v59 }
  0x71   : > { %3744 = vmatprep.mubr.msk.f32.mxu0 %vm314_vm0, %v4753_v60 }
  0x74   : > { %3745 = vmatmul.mubr.msk.f32.gmra.mrb[42].mxu0 %vm314_vm0, %v4760_v61 }
  0x75   : > { %3747 = vmatprep.mubr.msk.f32.mxu0 %vm314_vm0, %v4763_v62 }
  0x78   : > { %3748 = vmatmul.mubr.msk.f32.gmra.mrb[44].mxu0 %vm314_vm0, %v4770_v63 }
  0x79   : > { %3750 = vmatprep.mubr.msk.f32.mxu0 %vm314_vm0, %v4773_v0 }
  0x7c   : > { %3751 = vmatmul.mubr.msk.f32.gmra.mrb[46].mxu0 %vm314_vm0, %v4780_v1 }
  0x7d   : > { %3753 = vmatprep.mubr.msk.f32.mxu0 %vm314_vm0, %v4783_v2 }
  0x80   : > { %3754 = vmatmul.mubr.msk.f32.gmra.mrb[48].mxu0 %vm314_vm0, %v4790_v3 }
  0x81   : > { %3756 = vmatprep.mubr.msk.f32.mxu0 %vm314_vm0, %v4793_v4 }
  0x84   : > { %3757 = vmatmul.mubr.msk.f32.gmra.mrb[50].mxu0 %vm314_vm0, %v4800_v5 }
  0x85   : > { %3759 = vmatprep.mubr.msk.f32.mxu0 %vm314_vm0, %v4803_v6 }
  0x88   : > { %3760 = vmatmul.mubr.msk.f32.gmra.mrb[52].mxu0 %vm314_vm0, %v4810_v7 }
  0x89   : > { %3762 = vmatprep.mubr.msk.f32.mxu0 %vm314_vm0, %v4813_v8 }
  0x8c   : > { %3763 = vmatmul.mubr.msk.f32.gmra.mrb[54].mxu0 %vm314_vm0, %v4826_v24 }
  0x8d   : > { %3765 = vmatprep.mubr.msk.f32.mxu0 %vm314_vm0, %v4829_v29 }
  0x90   : > { %3766 = vmatmul.mubr.msk.f32.gmra.mrb[56].mxu0 %vm314_vm0, %v4836_v28 }
  0x91   : > { %3889 = vmatprep.mubr.msk.f32.mxu0 %vm314_vm0, %v4509_v9 }
  0x94   : > { %3890 = vmatmul.mubr.msk.f32.vlgmr.msra.gmra.mrb[58].mxu0 %vm314_vm0, %v4514_v10 }
  0x95   : > { %3892 = vmatprep.mubr.msk.f32.mxu0 %vm314_vm0, %v4517_v11 }
  0x98   : > { %3893 = vmatmul.mubr.msk.f32.gmra.mrb[60].mxu0 %vm314_vm0, %v4524_v12  ;;  %v4400_v12 = vmov 0  }
  0x99   : > { %3895 = vmatprep.mubr.msk.f32.mxu0 %vm314_vm0, %v4527_v13  ;;  %4325 = vset.pattern.permute.xlu0 %v4400_v12 }
  0x9a   : > { %4326 = vset.pattern.permute.xlu1 %v4400_v12 }
  0x9c   : > { %3896 = vmatmul.mubr.msk.f32.gmra.mrb[62].mxu0 %vm314_vm0, %v4534_v14 }
  0x9d   : > { %3898 = vmatprep.mubr.msk.f32.mxu0 %vm314_vm0, %v4537_v15 }
  0xa0   : > { %3899 = vmatmul.mubr.msk.f32.gmra.mrb[64].mxu0 %vm314_vm0, %v4544_v16 }
  0xa1   : > { %3901 = vmatprep.mubr.msk.f32.mxu0 %vm314_vm0, %v4547_v17 }
  0xa4   : > { %3902 = vmatmul.mubr.msk.f32.gmra.mrb[66].mxu0 %vm314_vm0, %v4560_v20 }
  0xa5   : > { %3904 = vmatprep.mubr.msk.f32.mxu0 %vm314_vm0, %v4563_v21 }
  0xa8   : > { %3905 = vmatmul.mubr.msk.f32.gmra.mrb[68].mxu0 %vm314_vm0, %v4581_v26 }
  0xa9   : > { %3907 = vmatprep.mubr.msk.f32.mxu0 %vm314_vm0, %v4586_v27 }
  0xac   : > { %3908 = vmatmul.mubr.msk.f32.gmra.mrb[70].mxu0 %vm314_vm0, %v4601_v30 }
  0xad   : > { %3910 = vmatprep.mubr.msk.f32.mxu0 %vm314_vm0, %v4606_v31 }
  0xb0   : > { %3911 = vmatmul.mubr.msk.f32.gmra.mrb[72].mxu0 %vm314_vm0, %v4618_v33 }
  0xb1   : > { %3913 = vmatprep.mubr.msk.f32.mxu0 %vm314_vm0, %v4623_v34 }
  0xb4   : > { %3914 = vmatmul.mubr.msk.f32.gmra.mrb[74].mxu0 %vm314_vm0, %v4630_v35 }
  0xb5   : > { %3916 = vmatprep.mubr.msk.f32.mxu0 %vm314_vm0, %v4633_v36 }
  0xb8   : > { %3917 = vmatmul.mubr.msk.f32.gmra.mrb[76].mxu0 %vm314_vm0, %v4640_v37 }
  0xb9   : > { %3919 = vmatprep.mubr.msk.f32.mxu0 %vm314_vm0, %v4643_v38 }
  0xbc   : > { %3920 = vmatmul.mubr.msk.f32.gmra.mrb[78].mxu0 %vm314_vm0, %v4650_v39 }
  0xbd   : > { %3922 = vmatprep.mubr.msk.f32.mxu0 %vm314_vm0, %v4653_v40 }
  0xc0   : > { %3923 = vmatmul.mubr.msk.f32.gmra.mrb[80].mxu0 %vm314_vm0, %v4660_v41 }
  0xc1   : > { %3925 = vmatprep.mubr.msk.f32.mxu0 %vm314_vm0, %v4663_v42 }
  0xc4   : > { %3926 = vmatmul.mubr.msk.f32.gmra.mrb[82].mxu0 %vm314_vm0, %v4670_v43 }
  0xc5   : > { %3928 = vmatprep.mubr.msk.f32.mxu0 %vm314_vm0, %v4673_v44 }
  0xc8   : > { %3929 = vmatmul.mubr.msk.f32.gmra.mrb[84].mxu0 %vm314_vm0, %v4680_v45 }
  0xc9   : > { %3931 = vmatprep.mubr.msk.f32.mxu0 %vm314_vm0, %v4683_v46 }
  0xcc   : > { %3932 = vmatmul.mubr.msk.f32.gmra.mrb[86].mxu0 %vm314_vm0, %v4690_v47 }
  0xcd   : > { %3934 = vmatprep.mubr.msk.f32.mxu0 %vm314_vm0, %v4693_v48 }
  0xd0   : > { %3935 = vmatmul.mubr.msk.f32.gmra.mrb[88].mxu0 %vm314_vm0, %v4700_v49 }
  0xd1   : > { %3937 = vmatprep.mubr.msk.f32.mxu0 %vm314_vm0, %v4703_v50 }
  0xd4   : > { %3938 = vmatmul.mubr.msk.f32.gmra.mrb[90].mxu0 %vm314_vm0, %v4710_v51 }
  0xd5   : > { %3940 = vmatprep.mubr.msk.f32.mxu0 %vm314_vm0, %v4713_v52 }
  0xd8   : > { %3941 = vmatmul.mubr.msk.f32.gmra.mrb[92].mxu0 %vm314_vm0, %v4720_v53 }
  0xd9   : > { %3943 = vmatprep.mubr.msk.f32.mxu0 %vm314_vm0, %v4723_v54 }
  0xdc   : > { %3944 = vmatmul.mubr.msk.f32.gmra.mrb[94].mxu0 %vm314_vm0, %v4730_v55 }
  0xdd   : > { %3946 = vmatprep.mubr.msk.f32.mxu0 %vm314_vm0, %v4733_v56 }
  0xe0   : > { %3947 = vmatmul.mubr.msk.f32.gmra.mrb[96].mxu0 %vm314_vm0, %v4740_v57 }
  0xe1   : > { %3949 = vmatprep.mubr.msk.f32.mxu0 %vm314_vm0, %v4743_v58 }
  0xe4   : > { %3950 = vmatmul.mubr.msk.f32.gmra.mrb[98].mxu0 %vm314_vm0, %v4750_v59 }
  0xe5   : > { %3952 = vmatprep.mubr.msk.f32.mxu0 %vm314_vm0, %v4753_v60 }
  0xe8   : > { %3953 = vmatmul.mubr.msk.f32.gmra.mrb[100].mxu0 %vm314_vm0, %v4760_v61 }
  0xe9   : > { %3955 = vmatprep.mubr.msk.f32.mxu0 %vm314_vm0, %v4763_v62 }
  0xec   : > { %3956 = vmatmul.mubr.msk.f32.gmra.mrb[102].mxu0 %vm314_vm0, %v4770_v63 }
  0xed   : > { %3958 = vmatprep.mubr.msk.f32.mxu0 %vm314_vm0, %v4773_v0 }
  0xf0   : > { %3959 = vmatmul.mubr.msk.f32.gmra.mrb[104].mxu0 %vm314_vm0, %v4780_v1 }
  0xf1   : > { %3961 = vmatprep.mubr.msk.f32.mxu0 %vm314_vm0, %v4783_v2 }
  0xf3   : > { %v3683_v9 = vpop.f32.mrb[0].mxu0 }
  0xf4   : > { %v573_v10 = vpop.f32.mrb[1].mxu0  ;;  %v893_v13 = vmul.f32 %v3683_v9, %v3683_v9  ;;  %3962 = vmatmul.mubr.msk.f32.gmra.mrb[106].mxu0 %vm314_vm0, %v4790_v3 }
  0xf5   : > { %v892_v11 = vmul.f32 %v573_v10, %v573_v10  ;;  %v4918_v36 = vpop.f32.mrb[0].mxu1  ;;  %3964 = vmatprep.mubr.msk.f32.mxu0 %vm314_vm0, %v4793_v4 }
  0xf6   : > { %v4922_v38 = vpop.f32.mrb[1].mxu1 }
  0xf7   : > { %v3686_v14 = vpop.f32.mrb[2].mxu0  ;;  %3785 = vmatprep.mubr.msk.f32.mxu1 %vm314_vm0, %v892_v11 }
  0xf8   : > { %v583_v15 = vpop.f32.mrb[3].mxu0  ;;  %3786 = vmatmul.mubr.msk.f32.vlgmr.msra.gmra.mrb[6].mxu1 %vm314_vm0, %v893_v13  ;;  %v895_v17 = vmul.f32 %v3686_v14, %v3686_v14  ;;  %3965 = vmatmul.mubr.msk.f32.gmra.mrb[108].mxu0 %vm314_vm0, %v4800_v5 }
  0xf9   : > { %v894_v16 = vmul.f32 %v583_v15, %v583_v15  ;;  %v4928_v42 = vpop.f32.mrb[2].mxu1  ;;  %3967 = vmatprep.mubr.msk.f32.mxu0 %vm314_vm0, %v4803_v6 }
  0xfa   : > { %v4932_v44 = vpop.f32.mrb[3].mxu1 }
  0xfb   : > { %v3689_v20 = vpop.f32.mrb[4].mxu0  ;;  %3788 = vmatprep.mubr.msk.f32.mxu1 %vm314_vm0, %v894_v16 }
  0xfc   : > { %v897_v21 = vmul.f32 %v3689_v20, %v3689_v20  ;;  %v593_v25 = vpop.f32.mrb[5].mxu0  ;;  %3789 = vmatmul.mubr.msk.f32.gmra.mrb[8].mxu1 %vm314_vm0, %v895_v17  ;;  %3968 = vmatmul.mubr.msk.f32.gmra.mrb[110].mxu0 %vm314_vm0, %v4810_v7 }
  0xfd   : > { %v896_v26 = vmul.f32 %v593_v25, %v593_v25  ;;  %v4938_v48 = vpop.f32.mrb[4].mxu1  ;;  %3970 = vmatprep.mubr.msk.f32.mxu0 %vm314_vm0, %v4813_v8 }
  0xfe   : > { %v4942_v50 = vpop.f32.mrb[5].mxu1 }
  0xff   : > { %v3692_v27 = vpop.f32.mrb[6].mxu0  ;;  %3791 = vmatprep.mubr.msk.f32.mxu1 %vm314_vm0, %v896_v26 }
 0x100   : > { %v899_v30 = vmul.f32 %v3692_v27, %v3692_v27  ;;  %v603_v31 = vpop.f32.mrb[7].mxu0  ;;  %3792 = vmatmul.mubr.msk.f32.gmra.mrb[10].mxu1 %vm314_vm0, %v897_v21  ;;  %3971 = vmatmul.mubr.msk.f32.gmra.mrb[112].mxu0 %vm314_vm0, %v4826_v24 }
 0x101   : > { %v898_v32 = vmul.f32 %v603_v31, %v603_v31  ;;  %3973 = vmatprep.mubr.msk.f32.mxu0 %vm314_vm0, %v4829_v29 }
 0x103   : > { %v3695_v33 = vpop.f32.mrb[8].mxu0  ;;  %3794 = vmatprep.mubr.msk.f32.mxu1 %vm314_vm0, %v898_v32 }
 0x104   : > { %v901_v34 = vmul.f32 %v3695_v33, %v3695_v33  ;;  %v613_v35 = vpop.f32.mrb[9].mxu0  ;;  %3795 = vmatmul.mubr.msk.f32.gmra.mrb[12].mxu1 %vm314_vm0, %v899_v30  ;;  %3974 = vmatmul.mubr.msk.f32.gmra.mrb[114].mxu0 %vm314_vm0, %v4836_v28 }
 0x105   : > { %v900_v37 = vmul.f32 %v613_v35, %v613_v35  ;;  %3976 = vmatprep.mubr.msk.f32.mxu0 %vm314_vm0, %v4566_v22  ;;  %v5805_v22 = vld [vmem:[#allocation6_spill] sm:$0xff] }
 0x107   : > { %v3698_v39 = vpop.f32.mrb[10].mxu0  ;;  %3797 = vmatprep.mubr.msk.f32.mxu1 %vm314_vm0, %v900_v37 }
 0x108   : > { %v903_v40 = vmul.f32 %v3698_v39, %v3698_v39  ;;  %v623_v41 = vpop.f32.mrb[11].mxu0  ;;  %3798 = vmatmul.mubr.msk.f32.gmra.mrb[14].mxu1 %vm314_vm0, %v901_v34  ;;  %3977 = vmatmul.mubr.msk.f32.gmra.mrb[116].mxu0 %vm314_vm0, %v4569_v23 }
 0x109   : > { %v902_v43 = vmul.f32 %v623_v41, %v623_v41 }
 0x10b   : > { %v3701_v45 = vpop.f32.mrb[12].mxu0  ;;  %3800 = vmatprep.mubr.msk.f32.mxu1 %vm314_vm0, %v902_v43 }
 0x10c   : > { %v905_v46 = vmul.f32 %v3701_v45, %v3701_v45  ;;  %v633_v47 = vpop.f32.mrb[13].mxu0  ;;  %3801 = vmatmul.mubr.msk.f32.gmra.mrb[16].mxu1 %vm314_vm0, %v903_v40  ;;  %v5804_v40 = vld [vmem:[#allocation5_spill] sm:$0xff] }
 0x10d   : > { %v904_v49 = vmul.f32 %v633_v47, %v633_v47  ;;  %3979 = vmatprep.mubr.msk.f32.mxu0 %vm314_vm0, %v5804_v40 }
 0x10e   : > { %3980 = vmatmul.mubr.msk.f32.gmra.mrb[118].mxu0 %vm314_vm0, %v5805_v22 }
 0x10f   : > { %v3704_v51 = vpop.f32.mrb[14].mxu0  ;;  %3803 = vmatprep.mubr.msk.f32.mxu1 %vm314_vm0, %v904_v49 }
 0x110   : > { %v907_v52 = vmul.f32 %v3704_v51, %v3704_v51  ;;  %v643_v18 = vpop.f32.mrb[15].mxu0  ;;  %3804 = vmatmul.mubr.msk.f32.gmra.mrb[18].mxu1 %vm314_vm0, %v905_v46  ;;  %v5806_v46 = vld [vmem:[#allocation7_spill] sm:$0xff]  ;;  %v5807_v51 = vld [vmem:[#allocation8_spill] sm:$0xff] }
 0x111   : > { %v906_v19 = vmul.f32 %v643_v18, %v643_v18  ;;  %3982 = vmatprep.mubr.msk.f32.mxu0 %vm314_vm0, %v5806_v46 }
 0x112   : > { %3983 = vmatmul.mubr.msk.f32.gmra.mrb[120].mxu0 %vm314_vm0, %v5807_v51 }
 0x113   : > { %v3707_v53 = vpop.f32.mrb[16].mxu0  ;;  %3806 = vmatprep.mubr.msk.f32.mxu1 %vm314_vm0, %v906_v19 }
 0x114   : > { %v909_v54 = vmul.f32 %v3707_v53, %v3707_v53  ;;  %v653_v9 = vpop.f32.mrb[17].mxu0  ;;  %3807 = vmatmul.mubr.msk.f32.gmra.mrb[20].mxu1 %vm314_vm0, %v907_v52 }
 0x115   : > { %v908_v10 = vmul.f32 %v653_v9, %v653_v9 }
 0x117   : > { %v3710_v11 = vpop.f32.mrb[18].mxu0  ;;  %3809 = vmatprep.mubr.msk.f32.mxu1 %vm314_vm0, %v908_v10 }
 0x118   : > { %v911_v55 = vmul.f32 %v3710_v11, %v3710_v11  ;;  %v663_v12 = vpop.f32.mrb[19].mxu0  ;;  %3810 = vmatmul.mubr.msk.f32.gmra.mrb[22].mxu1 %vm314_vm0, %v909_v54 }
 0x119   : > { %v910_v56 = vmul.f32 %v663_v12, %v663_v12 }
 0x11b   : > { %v3713_v13 = vpop.f32.mrb[20].mxu0  ;;  %3812 = vmatprep.mubr.msk.f32.mxu1 %vm314_vm0, %v910_v56 }
 0x11c   : > { %v913_v57 = vmul.f32 %v3713_v13, %v3713_v13  ;;  %v673_v14 = vpop.f32.mrb[21].mxu0  ;;  %3813 = vmatmul.mubr.msk.f32.gmra.mrb[24].mxu1 %vm314_vm0, %v911_v55 }
 0x11d   : > { %v912_v58 = vmul.f32 %v673_v14, %v673_v14 }
 0x11f   : > { %v3716_v15 = vpop.f32.mrb[22].mxu0  ;;  %3815 = vmatprep.mubr.msk.f32.mxu1 %vm314_vm0, %v912_v58 }
 0x120   : > { %v915_v59 = vmul.f32 %v3716_v15, %v3716_v15  ;;  %v683_v16 = vpop.f32.mrb[23].mxu0  ;;  %3816 = vmatmul.mubr.msk.f32.gmra.mrb[26].mxu1 %vm314_vm0, %v913_v57 }
 0x121   : > { %v914_v60 = vmul.f32 %v683_v16, %v683_v16 }
 0x123   : > { %v3719_v17 = vpop.f32.mrb[24].mxu0  ;;  %3818 = vmatprep.mubr.msk.f32.mxu1 %vm314_vm0, %v914_v60 }
 0x124   : > { %v917_v61 = vmul.f32 %v3719_v17, %v3719_v17  ;;  %v693_v20 = vpop.f32.mrb[25].mxu0  ;;  %3819 = vmatmul.mubr.msk.f32.gmra.mrb[28].mxu1 %vm314_vm0, %v915_v59 }
 0x125   : > { %v916_v62 = vmul.f32 %v693_v20, %v693_v20 }
 0x127   : > { %v3722_v21 = vpop.f32.mrb[26].mxu0  ;;  %3821 = vmatprep.mubr.msk.f32.mxu1 %vm314_vm0, %v916_v62 }
 0x128   : > { %v919_v63 = vmul.f32 %v3722_v21, %v3722_v21  ;;  %v703_v25 = vpop.f32.mrb[27].mxu0  ;;  %3822 = vmatmul.mubr.msk.f32.gmra.mrb[30].mxu1 %vm314_vm0, %v917_v61 }
 0x129   : > { %v918_v0 = vmul.f32 %v703_v25, %v703_v25 }
 0x12b   : > { %v3725_v26 = vpop.f32.mrb[28].mxu0  ;;  %3824 = vmatprep.mubr.msk.f32.mxu1 %vm314_vm0, %v918_v0 }
 0x12c   : > { %v921_v1 = vmul.f32 %v3725_v26, %v3725_v26  ;;  %v713_v27 = vpop.f32.mrb[29].mxu0  ;;  %3825 = vmatmul.mubr.msk.f32.gmra.mrb[32].mxu1 %vm314_vm0, %v919_v63 }
 0x12d   : > { %v920_v2 = vmul.f32 %v713_v27, %v713_v27 }
 0x12f   : > { %v3728_v30 = vpop.f32.mrb[30].mxu0  ;;  %3827 = vmatprep.mubr.msk.f32.mxu1 %vm314_vm0, %v920_v2 }
 0x130   : > { %v923_v3 = vmul.f32 %v3728_v30, %v3728_v30  ;;  %v723_v31 = vpop.f32.mrb[31].mxu0  ;;  %3828 = vmatmul.mubr.msk.f32.gmra.mrb[34].mxu1 %vm314_vm0, %v921_v1 }
 0x131   : > { %v922_v4 = vmul.f32 %v723_v31, %v723_v31  ;;  %v950_v31 = vmul.f32 %v4922_v38, %v4922_v38  ;;  %v954_v38 = vmul.f32 %v4942_v50, %v4942_v50 }
 0x133   : > { %v3731_v32 = vpop.f32.mrb[32].mxu0  ;;  %3830 = vmatprep.mubr.msk.f32.mxu1 %vm314_vm0, %v922_v4  ;;  %v951_v4 = vmul.f32 %v4918_v36, %v4918_v36  ;;  %v955_v36 = vmul.f32 %v4938_v48, %v4938_v48 }
 0x134   : > { %v925_v5 = vmul.f32 %v3731_v32, %v3731_v32  ;;  %v733_v33 = vpop.f32.mrb[33].mxu0  ;;  %3831 = vmatmul.mubr.msk.f32.gmra.mrb[36].mxu1 %vm314_vm0, %v923_v3  ;;  %v952_v32 = vmul.f32 %v4932_v44, %v4932_v44 }
 0x135   : > { %v924_v6 = vmul.f32 %v733_v33, %v733_v33 }
 0x137   : > { %v3734_v34 = vpop.f32.mrb[34].mxu0  ;;  %3833 = vmatprep.mubr.msk.f32.mxu1 %vm314_vm0, %v924_v6 }
 0x138   : > { %v927_v7 = vmul.f32 %v3734_v34, %v3734_v34  ;;  %v743_v35 = vpop.f32.mrb[35].mxu0  ;;  %3834 = vmatmul.mubr.msk.f32.gmra.mrb[38].mxu1 %vm314_vm0, %v925_v5  ;;  %v953_v5 = vmul.f32 %v4928_v42, %v4928_v42 }
 0x139   : > { %v926_v8 = vmul.f32 %v743_v35, %v743_v35 }
 0x13b   : > { %v3737_v37 = vpop.f32.mrb[36].mxu0  ;;  %3836 = vmatprep.mubr.msk.f32.mxu1 %vm314_vm0, %v926_v8 }
 0x13c   : > { %v929_v24 = vmul.f32 %v3737_v37, %v3737_v37  ;;  %v753_v39 = vpop.f32.mrb[37].mxu0  ;;  %3837 = vmatmul.mubr.msk.f32.gmra.mrb[40].mxu1 %vm314_vm0, %v927_v7 }
 0x13d   : > { %v928_v29 = vmul.f32 %v753_v39, %v753_v39 }
 0x13f   : > { %v3740_v41 = vpop.f32.mrb[38].mxu0  ;;  %3839 = vmatprep.mubr.msk.f32.mxu1 %vm314_vm0, %v928_v29 }
 0x140   : > { %v931_v28 = vmul.f32 %v3740_v41, %v3740_v41  ;;  %v763_v43 = vpop.f32.mrb[39].mxu0  ;;  %3840 = vmatmul.mubr.msk.f32.gmra.mrb[42].mxu1 %vm314_vm0, %v929_v24 }
 0x141   : > { %v930_v45 = vmul.f32 %v763_v43, %v763_v43 }
 0x143   : > { %v3743_v47 = vpop.f32.mrb[40].mxu0  ;;  %3842 = vmatprep.mubr.msk.f32.mxu1 %vm314_vm0, %v930_v45 }
 0x144   : > { %v933_v23 = vmul.f32 %v3743_v47, %v3743_v47  ;;  %v773_v49 = vpop.f32.mrb[41].mxu0  ;;  %3843 = vmatmul.mubr.msk.f32.gmra.mrb[44].mxu1 %vm314_vm0, %v931_v28 }
 0x145   : > { %v932_v52 = vmul.f32 %v773_v49, %v773_v49 }
 0x147   : > { %v3746_v18 = vpop.f32.mrb[42].mxu0  ;;  %3845 = vmatprep.mubr.msk.f32.mxu1 %vm314_vm0, %v932_v52 }
 0x148   : > { %v935_v19 = vmul.f32 %v3746_v18, %v3746_v18  ;;  %v783_v53 = vpop.f32.mrb[43].mxu0  ;;  %3846 = vmatmul.mubr.msk.f32.gmra.mrb[46].mxu1 %vm314_vm0, %v933_v23 }
 0x149   : > { %v934_v54 = vmul.f32 %v783_v53, %v783_v53 }
 0x14b   : > { %v3749_v9 = vpop.f32.mrb[44].mxu0  ;;  %3848 = vmatprep.mubr.msk.f32.mxu1 %vm314_vm0, %v934_v54 }
 0x14c   : > { %v937_v10 = vmul.f32 %v3749_v9, %v3749_v9  ;;  %v793_v11 = vpop.f32.mrb[45].mxu0  ;;  %3849 = vmatmul.mubr.msk.f32.gmra.mrb[48].mxu1 %vm314_vm0, %v935_v19 }
 0x14d   : > { %v936_v55 = vmul.f32 %v793_v11, %v793_v11 }
 0x14f   : > { %3851 = vmatprep.mubr.msk.f32.mxu1 %vm314_vm0, %v936_v55  ;;  %v3752_v12 = vpop.f32.mrb[46].mxu0 }
 0x150   : > { %3852 = vmatmul.mubr.msk.f32.gmra.mrb[50].mxu1 %vm314_vm0, %v937_v10  ;;  %v939_v56 = vmul.f32 %v3752_v12, %v3752_v12  ;;  %v803_v13 = vpop.f32.mrb[47].mxu0 }
 0x151   : > { %v938_v57 = vmul.f32 %v803_v13, %v803_v13 }
 0x153   : > { %v3755_v14 = vpop.f32.mrb[48].mxu0  ;;  %3854 = vmatprep.mubr.msk.f32.mxu1 %vm314_vm0, %v938_v57 }
 0x154   : > { %v941_v58 = vmul.f32 %v3755_v14, %v3755_v14  ;;  %v813_v15 = vpop.f32.mrb[49].mxu0  ;;  %3855 = vmatmul.mubr.msk.f32.gmra.mrb[52].mxu1 %vm314_vm0, %v939_v56 }
 0x155   : > { %v940_v59 = vmul.f32 %v813_v15, %v813_v15 }
 0x157   : > { %v3758_v16 = vpop.f32.mrb[50].mxu0  ;;  %3857 = vmatprep.mubr.msk.f32.mxu1 %vm314_vm0, %v940_v59 }
 0x158   : > { %v943_v60 = vmul.f32 %v3758_v16, %v3758_v16  ;;  %v823_v17 = vpop.f32.mrb[51].mxu0  ;;  %3858 = vmatmul.mubr.msk.f32.gmra.mrb[54].mxu1 %vm314_vm0, %v941_v58 }
 0x159   : > { %v942_v61 = vmul.f32 %v823_v17, %v823_v17 }
 0x15b   : > { %v3761_v20 = vpop.f32.mrb[52].mxu0  ;;  %3860 = vmatprep.mubr.msk.f32.mxu1 %vm314_vm0, %v942_v61 }
 0x15c   : > { %v945_v62 = vmul.f32 %v3761_v20, %v3761_v20  ;;  %v833_v21 = vpop.f32.mrb[53].mxu0  ;;  %3861 = vmatmul.mubr.msk.f32.gmra.mrb[56].mxu1 %vm314_vm0, %v943_v60 }
 0x15d   : > { %v944_v63 = vmul.f32 %v833_v21, %v833_v21 }
 0x15f   : > { %v3764_v25 = vpop.f32.mrb[54].mxu0  ;;  %3863 = vmatprep.mubr.msk.f32.mxu1 %vm314_vm0, %v944_v63 }
 0x160   : > { %v947_v0 = vmul.f32 %v3764_v25, %v3764_v25  ;;  %v843_v26 = vpop.f32.mrb[55].mxu0  ;;  %3864 = vmatmul.mubr.msk.f32.gmra.mrb[58].mxu1 %vm314_vm0, %v945_v62 }
 0x161   : > { %v946_v1 = vmul.f32 %v843_v26, %v843_v26 }
 0x163   : > { %v3767_v27 = vpop.f32.mrb[56].mxu0  ;;  %3866 = vmatprep.mubr.msk.f32.mxu1 %vm314_vm0, %v946_v1 }
 0x164   : > { %v949_v2 = vmul.f32 %v3767_v27, %v3767_v27  ;;  %v853_v30 = vpop.f32.mrb[57].mxu0  ;;  %3867 = vmatmul.mubr.msk.f32.gmra.mrb[60].mxu1 %vm314_vm0, %v947_v0 }
 0x165   : > { %v948_v3 = vmul.f32 %v853_v30, %v853_v30 }
 0x167   : > { %3869 = vmatprep.mubr.msk.f32.mxu1 %vm314_vm0, %v948_v3  ;;  %v5062_v33 = vpop.f32.mrb[58].mxu0 }
 0x168   : > { %3870 = vmatmul.mubr.msk.f32.gmra.mrb[62].mxu1 %vm314_vm0, %v949_v2  ;;  %v5064_v6 = vpop.f32.mrb[59].mxu0 }
 0x169   : > { %3872 = vmatprep.mubr.msk.f32.mxu1 %vm314_vm0, %v950_v31 }
 0x16b   : > { %v5066_v7 = vpop.f32.mrb[60].mxu0 }
 0x16c   : > { %3873 = vmatmul.mubr.msk.f32.gmra.mrb[64].mxu1 %vm314_vm0, %v951_v4  ;;  %v5068_v48 = vpop.f32.mrb[61].mxu0 }
 0x16d   : > { %3875 = vmatprep.mubr.msk.f32.mxu1 %vm314_vm0, %v952_v32 }
 0x16f   : > { %v5070_v8 = vpop.f32.mrb[62].mxu0 }
 0x170   : > { %3876 = vmatmul.mubr.msk.f32.gmra.mrb[66].mxu1 %vm314_vm0, %v953_v5  ;;  %v5072_v24 = vpop.f32.mrb[63].mxu0 }
 0x171   : > { %3878 = vmatprep.mubr.msk.f32.mxu1 %vm314_vm0, %v954_v38 }
 0x173   : > { %v5074_v29 = vpop.f32.mrb[64].mxu0 }
 0x174   : > { %3879 = vmatmul.mubr.msk.f32.gmra.mrb[68].mxu1 %vm314_vm0, %v955_v36  ;;  %v5076_v41 = vpop.f32.mrb[65].mxu0 }
 0x177   : > { %v5078_v43 = vpop.f32.mrb[66].mxu0 }
 0x178   : > { %v5080_v45 = vpop.f32.mrb[67].mxu0 }
 0x17b   : > { %v5082_v47 = vpop.f32.mrb[68].mxu0 }
 0x17c   : > { %v5084_v49 = vpop.f32.mrb[69].mxu0 }
 0x17f   : > { %v5086_v52 = vpop.f32.mrb[70].mxu0 }
 0x180   : > { %v5088_v19 = vpop.f32.mrb[71].mxu0 }
 0x183   : > { %v5090_v54 = vpop.f32.mrb[72].mxu0 }
 0x184   : > { %v5092_v10 = vpop.f32.mrb[73].mxu0 }
 0x187   : > { %v5094_v55 = vpop.f32.mrb[74].mxu0 }
 0x188   : > { %v5096_v56 = vpop.f32.mrb[75].mxu0 }
 0x18b   : > { %v5098_v57 = vpop.f32.mrb[76].mxu0 }
 0x18c   : > { %v5100_v58 = vpop.f32.mrb[77].mxu0 }
 0x18f   : > { %v5102_v59 = vpop.f32.mrb[78].mxu0 }
 0x190   : > { %v5104_v60 = vpop.f32.mrb[79].mxu0 }
 0x193   : > { %v5106_v61 = vpop.f32.mrb[80].mxu0 }
 0x194   : > { %v5108_v62 = vpop.f32.mrb[81].mxu0 }
 0x197   : > { %v5110_v63 = vpop.f32.mrb[82].mxu0 }
 0x198   : > { %v5112_v0 = vpop.f32.mrb[83].mxu0 }
 0x19b   : > { %v5114_v1 = vpop.f32.mrb[84].mxu0 }
 0x19c   : > { %v5116_v2 = vpop.f32.mrb[85].mxu0 }
 0x19f   : > { %v5120_v3 = vpop.f32.mrb[86].mxu0 }
 0x1a0   : > { %5808 = vst [vmem:[#allocation5_spill] sm:$0xff] %v5120_v3  ;;  %v5122_v4 = vpop.f32.mrb[87].mxu0 }
 0x1a1   : > { %5809 = vst [vmem:[#allocation6_spill] sm:$0xff] %v5122_v4  ;;  %v2318_v4 = vmul.f32 2.0, %v5062_v33  ;;  %v2319_v33 = vmul.f32 2.0, %v5068_v48 }
 0x1a3   : > { %v5124_v32 = vpop.f32.mrb[88].mxu0 }
 0x1a4   : > { %5810 = vst [vmem:[#allocation7_spill] sm:$0xff] %v5124_v32  ;;  %v5128_v36 = vpop.f32.mrb[89].mxu0 }
 0x1a5   : > { %5811 = vst [vmem:[#allocation8_spill] sm:$0xff] %v5128_v36  ;;  %v5211_v36 = vld [vmem:[%s5787_s4] ss:$0 sm:$0xff] }
 0x1cb   : > { %v3787_v44 = vpop.f32.mrb[6].mxu1 }
 0x1cc   : > { %1934 = vperm.xlu0 %4325, %v3787_v44   ;;  %v1218_v42 = vpop.f32.mrb[7].mxu1  ;;  %v5130_v44 = vpop.f32.mrb[90].mxu0 }
 0x1cd   : > { %5812 = vst [vmem:[#allocation9_spill] sm:$0xff] %v5130_v44 }
 0x1cf   : > { %v3790_v34 = vpop.f32.mrb[8].mxu1 }
 0x1d0   : > { %1929 = vperm.xlu0 %4325, %v1218_v42   ;;  %1944 = vperm.xlu1 %4326, %v3790_v34   ;;  %v1228_v50 = vpop.f32.mrb[9].mxu1 }
 0x1d3   : > { %v3793_v35 = vpop.f32.mrb[10].mxu1 }
 0x1d4   : > { %1939 = vperm.xlu1 %4326, %v1228_v50   ;;  %v1238_v37 = vpop.f32.mrb[11].mxu1  ;;  %v5134_v50 = vpop.f32.mrb[91].mxu0 }
 0x1d5   : > { %1949 = vperm.xlu0 %4325, %v1238_v37  }
 0x1d7   : > { %v3796_v39 = vpop.f32.mrb[12].mxu1 }
 0x1d8   : > { %1954 = vperm.xlu1 %4326, %v3793_v35   ;;  %v1248_v40 = vpop.f32.mrb[13].mxu1  ;;  %v5136_v35 = vpop.f32.mrb[92].mxu0 }
 0x1d9   : > { %1959 = vperm.xlu0 %4325, %v1248_v40   ;;  %5813 = vst [vmem:[#allocation10_spill] sm:$0xff] %v5136_v35  ;;  %v5140_v40 = vpop.f32.mrb[93].mxu0 }
 0x1db   : > { %v3799_v28 = vpop.f32.mrb[14].mxu1 }
 0x1dc   : > { %1964 = vperm.xlu1 %4326, %v3796_v39   ;;  %v1258_v22 = vpop.f32.mrb[15].mxu1 }
 0x1dd   : > { %1969 = vperm.xlu0 %4325, %v1258_v22  }
 0x1df   : > { %v3802_v46 = vpop.f32.mrb[16].mxu1 }
 0x1e0   : > { %1974 = vperm.xlu1 %4326, %v3799_v28   ;;  %v1268_v23 = vpop.f32.mrb[17].mxu1  ;;  %v5142_v28 = vpop.f32.mrb[94].mxu0 }
 0x1e1   : > { %1979 = vperm.xlu0 %4325, %v1268_v23   ;;  %5814 = vst [vmem:[#allocation11_spill] sm:$0xff] %v5142_v28  ;;  %v5146_v23 = vpop.f32.mrb[95].mxu0 }
 0x1e3   : > { %v3805_v51 = vpop.f32.mrb[18].mxu1 }
 0x1e4   : > { %1984 = vperm.xlu1 %4326, %v3802_v46   ;;  %v1278_v18 = vpop.f32.mrb[19].mxu1 }
 0x1e5   : > { %1989 = vperm.xlu0 %4325, %v1278_v18   ;;  %v5150_v18 = vpop.f32.mrb[96].mxu0 }
 0x1e6   : > { %5815 = vst [vmem:[#allocation12_spill] sm:$0xff] %v5150_v18 }
 0x1e7   : > { %v3808_v53 = vpop.f32.mrb[20].mxu1 }
 0x1e8   : > { %1994 = vperm.xlu1 %4326, %v3805_v51   ;;  %v1288_v9 = vpop.f32.mrb[21].mxu1 }
 0x1e9   : > { %1999 = vperm.xlu0 %4325, %v1288_v9   ;;  %v5152_v9 = vpop.f32.mrb[97].mxu0 }
 0x1eb   : > { %v3811_v11 = vpop.f32.mrb[22].mxu1 }
 0x1ec   : > { %2004 = vperm.xlu1 %4326, %v3808_v53   ;;  %v1298_v12 = vpop.f32.mrb[23].mxu1 }
 0x1ed   : > { %2009 = vperm.xlu0 %4325, %v1298_v12   ;;  %v5156_v12 = vpop.f32.mrb[98].mxu0 }
 0x1ee   : > { %5816 = vst [vmem:[#allocation13_spill] sm:$0xff] %v5156_v12 }
 0x1ef   : > { %v3814_v13 = vpop.f32.mrb[24].mxu1 }
 0x1f0   : > { %2014 = vperm.xlu1 %4326, %v3811_v11   ;;  %v1308_v14 = vpop.f32.mrb[25].mxu1 }
 0x1f1   : > { %2019 = vperm.xlu0 %4325, %v1308_v14   ;;  %v5158_v14 = vpop.f32.mrb[99].mxu0 }
 0x1f3   : > { %v3817_v15 = vpop.f32.mrb[26].mxu1 }
 0x1f4   : > { %2024 = vperm.xlu1 %4326, %v3814_v13   ;;  %v1318_v16 = vpop.f32.mrb[27].mxu1 }
 0x1f5   : > { %2029 = vperm.xlu0 %4325, %v1318_v16   ;;  %v5162_v16 = vpop.f32.mrb[100].mxu0 }
 0x1f6   : > { %5817 = vst [vmem:[#allocation14_spill] sm:$0xff] %v5162_v16 }
 0x1f7   : > { %v3820_v17 = vpop.f32.mrb[28].mxu1 }
 0x1f8   : > { %2034 = vperm.xlu1 %4326, %v3817_v15   ;;  %v1328_v20 = vpop.f32.mrb[29].mxu1 }
 0x1f9   : > { %2039 = vperm.xlu0 %4325, %v1328_v20   ;;  %v5164_v20 = vpop.f32.mrb[101].mxu0 }
 0x1fb   : > { %v3823_v21 = vpop.f32.mrb[30].mxu1 }
 0x1fc   : > { %2044 = vperm.xlu1 %4326, %v3820_v17   ;;  %v1338_v25 = vpop.f32.mrb[31].mxu1 }
 0x1fd   : > { %2049 = vperm.xlu0 %4325, %v1338_v25   ;;  %v5168_v25 = vpop.f32.mrb[102].mxu0 }
 0x1fe   : > { %5819 = vst [vmem:[#allocation16_spill] sm:$0xff] %v5168_v25 }
 0x1ff   : > { %v3826_v26 = vpop.f32.mrb[32].mxu1 }
 0x200   : > { %2054 = vperm.xlu1 %4326, %v3823_v21   ;;  %v1348_v27 = vpop.f32.mrb[33].mxu1 }
 0x201   : > { %2059 = vperm.xlu0 %4325, %v1348_v27   ;;  %v5170_v27 = vpop.f32.mrb[103].mxu0 }
 0x203   : > { %v5118_v30 = vpop.f32.mrb[34].mxu1 }
 0x204   : > { %2064 = vperm.xlu1 %4326, %v3826_v26   ;;  %v1358_v31 = vpop.f32.mrb[35].mxu1 }
 0x205   : > { %2069 = vperm.xlu0 %4325, %v1358_v31  }
 0x207   : > { %v5126_v5 = vpop.f32.mrb[36].mxu1 }
 0x208   : > { %v1368_v38 = vpop.f32.mrb[37].mxu1 }
 0x209   : > { %2079 = vperm.xlu0 %4325, %v1368_v38  }
 0x20b   : > { %v5132_v42 = vpop.f32.mrb[38].mxu1 }
 0x20c   : > { %v1378_v34 = vpop.f32.mrb[39].mxu1 }
 0x20d   : > { %2089 = vperm.xlu0 %4325, %v1378_v34  }
 0x20f   : > { %v5138_v37 = vpop.f32.mrb[40].mxu1 }
 0x210   : > { %v1388_v39 = vpop.f32.mrb[41].mxu1 }
 0x211   : > { %2099 = vperm.xlu0 %4325, %v1388_v39  }
 0x213   : > { %v5144_v22 = vpop.f32.mrb[42].mxu1 }
 0x214   : > { %v1398_v46 = vpop.f32.mrb[43].mxu1 }
 0x215   : > { %2109 = vperm.xlu0 %4325, %v1398_v46  }
 0x217   : > { %v5148_v51 = vpop.f32.mrb[44].mxu1 }
 0x218   : > { %v1408_v53 = vpop.f32.mrb[45].mxu1 }
 0x219   : > { %2119 = vperm.xlu0 %4325, %v1408_v53  }
 0x21b   : > { %v5154_v11 = vpop.f32.mrb[46].mxu1 }
 0x21c   : > { %v1418_v13 = vpop.f32.mrb[47].mxu1 }
 0x21d   : > { %2129 = vperm.xlu0 %4325, %v1418_v13  }
 0x21f   : > { %v5160_v15 = vpop.f32.mrb[48].mxu1 }
 0x220   : > { %v1428_v17 = vpop.f32.mrb[49].mxu1 }
 0x221   : > { %2139 = vperm.xlu0 %4325, %v1428_v17  }
 0x223   : > { %v5166_v21 = vpop.f32.mrb[50].mxu1 }
 0x224   : > { %5818 = vst [vmem:[#allocation15_spill] sm:$0xff] %v5166_v21  ;;  %v1438_v26 = vpop.f32.mrb[51].mxu1 }
 0x225   : > { %2149 = vperm.xlu0 %4325, %v1438_v26  }
 0x227   : > { %v5172_v31 = vpop.f32.mrb[52].mxu1 }
 0x228   : > { %5820 = vst [vmem:[#allocation17_spill] sm:$0xff] %v5172_v31  ;;  %v5174_v38 = vpop.f32.mrb[53].mxu1 }
 0x22b   : > { %v5176_v34 = vpop.f32.mrb[54].mxu1 }
 0x22c   : > { %5821 = vst [vmem:[#allocation18_spill] sm:$0xff] %v5176_v34  ;;  %v5178_v39 = vpop.f32.mrb[55].mxu1 }
 0x22f   : > { %v5180_v46 = vpop.f32.mrb[56].mxu1 }
 0x230   : > { %5822 = vst [vmem:[#allocation19_spill] sm:$0xff] %v5180_v46  ;;  %v5182_v53 = vpop.f32.mrb[57].mxu1 }
 0x233   : > { %v5184_v13 = vpop.f32.mrb[58].mxu1 }
 0x234   : > { %5823 = vst [vmem:[#allocation20_spill] sm:$0xff] %v5184_v13  ;;  %v5186_v17 = vpop.f32.mrb[59].mxu1 }
 0x237   : > { %v5188_v25 = vpop.f32.mrb[60].mxu1 }
 0x238   : > { %5824 = vst [vmem:[#allocation21_spill] sm:$0xff] %v5188_v25  ;;  %v5190_v16 = vpop.f32.mrb[61].mxu1  ;;  %v2317_v25 = vmul.f32 2.0, %v5064_v6 }
 0x23b   : > { %v5192_v26 = vpop.f32.mrb[62].mxu1 }
 0x23c   : > { %5825 = vst [vmem:[#allocation22_spill] sm:$0xff] %v5192_v26  ;;  %v5194_v12 = vpop.f32.mrb[63].mxu1 }
 0x23f   : > { %v5196_v18 = vpop.f32.mrb[64].mxu1 }
 0x240   : > { %5826 = vst [vmem:[#allocation23_spill] sm:$0xff] %v5196_v18  ;;  %v5198_v28 = vpop.f32.mrb[65].mxu1 }
 0x241   : > { %5827 = vst [vmem:[#allocation24_spill] sm:$0xff] %v5198_v28 }
 0x243   : > { %v5200_v35 = vpop.f32.mrb[66].mxu1 }
 0x244   : > { %5828 = vst [vmem:[#allocation25_spill] sm:$0xff] %v5200_v35  ;;  %v5202_v44 = vpop.f32.mrb[67].mxu1  ;;  %v2320_v35 = vmul.f32 2.0, %v5066_v7  ;;  %v2321_v7 = vmul.f32 2.0, %v5072_v24 }
 0x245   : > { %5829 = vst [vmem:[#allocation26_spill] sm:$0xff] %v5202_v44 }
 0x247   : > { %v5204_v32 = vpop.f32.mrb[68].mxu1 }
 0x248   : > { %5830 = vst [vmem:[#allocation27_spill] sm:$0xff] %v5204_v32  ;;  %v5206_v3 = vpop.f32.mrb[69].mxu1 }
 0x249   : > { %5831 = vst [vmem:[#allocation28_spill] sm:$0xff] %v5206_v3 }
 0x24b   : > { %v1935_v26 = vpop.permute.xlu0 %1934 }
 0x24c   : > { %v2254_v18 = vadd.f32 %v5211_v36, %v1935_v26 }
 0x24e   : > { %v2382_v13 = vsub.f32 %v2254_v18, %v2318_v4 }
 0x24f   : > { %v1930_v46 = vpop.permute.xlu0 %1929  ;;  %v1945_v32 = vpop.permute.xlu1 %1944 }
 0x250   : > { %v2253_v34 = vadd.f32 %v5211_v36, %v1930_v46  ;;  %v2256_v3 = vadd.f32 %v5211_v36, %v1945_v32  ;;  %v2449_v31 = vsel %vm2445_vm1, %v2382_v13, inf  ;;  %v2322_v32 = vmul.f32 2.0, %v5070_v8 }
 0x251   : > { %2450 = vmin.xlane.f32.xlu1 %v2449_v31 }
 0x252   : > { %v2381_v44 = vsub.f32 %v2253_v34, %v2317_v25  ;;  %v2384_v21 = vsub.f32 %v2256_v3, %v2320_v35  ;;  %v2323_v25 = vmul.f32 2.0, %v5076_v41 }
 0x253   : > { %v1940_v26 = vpop.permute.xlu1 %1939 }
 0x254   : > { %v2255_v28 = vadd.f32 %v5211_v36, %v1940_v26  ;;  %v1950_v6 = vpop.permute.xlu0 %1949  ;;  %v2446_v4 = vsel %vm2445_vm1, %v2381_v44, inf  ;;  %v2455_v18 = vsel %vm2445_vm1, %v2384_v21, inf  ;;  %v2324_v21 = vmul.f32 2.0, %v5074_v29 }
 0x255   : > { %v2257_v46 = vadd.f32 %v5211_v36, %v1950_v6  ;;  %2447 = vmin.xlane.f32.xlu0 %v2446_v4  ;;  %2456 = vmin.xlane.f32.xlu1 %v2455_v18  ;;  %v2325_v6 = vmul.f32 2.0, %v5080_v45 }
 0x256   : > { %v2383_v31 = vsub.f32 %v2255_v28, %v2319_v33 }
 0x257   : > { %v1955_v48 = vpop.permute.xlu1 %1954  ;;  %v2385_v24 = vsub.f32 %v2257_v46, %v2321_v7  ;;  %v2326_v7 = vmul.f32 2.0, %v5078_v43 }
 0x258   : > { %v2258_v3 = vadd.f32 %v5211_v36, %v1955_v48  ;;  %v1960_v35 = vpop.permute.xlu0 %1959  ;;  %v2452_v34 = vsel %vm2445_vm1, %v2383_v31, inf }
 0x259   : > { %v2259_v44 = vadd.f32 %v5211_v36, %v1960_v35  ;;  %2453 = vmin.xlane.f32.xlu0 %v2452_v34  ;;  %v2458_v4 = vsel %vm2445_vm1, %v2385_v24, inf  ;;  %v2328_v34 = vmul.f32 2.0, %v5082_v47  ;;  %v2330_v47 = vmul.f32 2.0, %v5086_v52 }
 0x25a   : > { %v2386_v13 = vsub.f32 %v2258_v3, %v2322_v32  ;;  %v2327_v32 = vmul.f32 2.0, %v5084_v49 }
 0x25b   : > { %v1965_v26 = vpop.permute.xlu1 %1964  ;;  %v2387_v41 = vsub.f32 %v2259_v44, %v2323_v25  ;;  %v2329_v44 = vmul.f32 2.0, %v5088_v19  ;;  %v2331_v19 = vmul.f32 2.0, %v5092_v10 }
 0x25c   : > { %v2260_v8 = vadd.f32 %v5211_v36, %v1965_v26  ;;  %v1970_v28 = vpop.permute.xlu0 %1969  ;;  %v2461_v33 = vsel %vm2445_vm1, %v2386_v13, inf }
 0x25d   : > { %v2261_v18 = vadd.f32 %v5211_v36, %v1970_v28  ;;  %2462 = vmin.xlane.f32.xlu1 %v2461_v33  ;;  %2459 = vmin.xlane.f32.xlu0 %v2458_v4  ;;  %v2464_v3 = vsel %vm2445_vm1, %v2387_v41, inf  ;;  %v4401_v28 = vmov 0.0|0.0  }
 0x25e   : > { %v2388_v46 = vsub.f32 %v2260_v8, %v2324_v21  ;;  %4149 = vmatprep.subr.bf16.mxu1 %v4401_v28 }
 0x25f   : > { %v1975_v29 = vpop.permute.xlu1 %1974  ;;  %v2389_v35 = vsub.f32 %v2261_v18, %v2325_v6 }
 0x260   : > { %v2262_v45 = vadd.f32 %v5211_v36, %v1975_v29  ;;  %v1980_v31 = vpop.permute.xlu0 %1979  ;;  %v2467_v48 = vsel %vm2445_vm1, %v2388_v46, inf }
 0x261   : > { %v2263_v25 = vadd.f32 %v5211_v36, %v1980_v31  ;;  %2468 = vmin.xlane.f32.xlu1 %v2467_v48  ;;  %2465 = vmin.xlane.f32.xlu0 %v2464_v3  ;;  %v2470_v26 = vsel %vm2445_vm1, %v2389_v35, inf  ;;  %v2333_v48 = vmul.f32 2.0, %v5096_v56 }
 0x262   : > { %v2390_v24 = vsub.f32 %v2262_v45, %v2326_v7  ;;  %v2332_v45 = vmul.f32 2.0, %v5090_v54 }
 0x263   : > { %v1985_v43 = vpop.permute.xlu1 %1984  ;;  %v2391_v8 = vsub.f32 %v2263_v25, %v2327_v32 }
 0x264   : > { %v2264_v49 = vadd.f32 %v5211_v36, %v1985_v43  ;;  %v1990_v21 = vpop.permute.xlu0 %1989  ;;  %v2473_v13 = vsel %vm2445_vm1, %v2390_v24, inf  ;;  %v2334_v43 = vmul.f32 2.0, %v5094_v55 }
 0x265   : > { %v2265_v6 = vadd.f32 %v5211_v36, %v1990_v21  ;;  %2474 = vmin.xlane.f32.xlu1 %v2473_v13  ;;  %2471 = vmin.xlane.f32.xlu0 %v2470_v26  ;;  %v2476_v46 = vsel %vm2445_vm1, %v2391_v8, inf }
 0x266   : > { %v2392_v33 = vsub.f32 %v2264_v49, %v2328_v34  ;;  %v2335_v49 = vmul.f32 2.0, %v5100_v58 }
 0x267   : > { %v1995_v4 = vpop.permute.xlu1 %1994  ;;  %v2393_v29 = vsub.f32 %v2265_v6, %v2329_v44 }
 0x268   : > { %v2266_v41 = vadd.f32 %v5211_v36, %v1995_v4  ;;  %v2000_v18 = vpop.permute.xlu0 %1999  ;;  %v2479_v7 = vsel %vm2445_vm1, %v2392_v33, inf  ;;  %v2337_v4 = vmul.f32 2.0, %v5104_v60 }
 0x269   : > { %v2267_v32 = vadd.f32 %v5211_v36, %v2000_v18  ;;  %2480 = vmin.xlane.f32.xlu1 %v2479_v7  ;;  %2477 = vmin.xlane.f32.xlu0 %v2476_v46  ;;  %v2482_v25 = vsel %vm2445_vm1, %v2393_v29, inf  ;;  %v2338_v29 = vmul.f32 2.0, %v5102_v59 }
 0x26a   : > { %v2394_v31 = vsub.f32 %v2266_v41, %v2330_v47  ;;  %v2336_v47 = vmul.f32 2.0, %v5098_v57 }
 0x26b   : > { %v2005_v52 = vpop.permute.xlu1 %2004  ;;  %v2395_v34 = vsub.f32 %v2267_v32, %v2331_v19 }
 0x26c   : > { %v2268_v10 = vadd.f32 %v5211_v36, %v2005_v52  ;;  %v2010_v3 = vpop.permute.xlu0 %2009  ;;  %v2485_v35 = vsel %vm2445_vm1, %v2394_v31, inf }
 0x26d   : > { %v2269_v24 = vadd.f32 %v5211_v36, %v2010_v3  ;;  %2486 = vmin.xlane.f32.xlu1 %v2485_v35  ;;  %2483 = vmin.xlane.f32.xlu0 %v2482_v25  ;;  %v2488_v26 = vsel %vm2445_vm1, %v2395_v34, inf  ;;  %v2340_v35 = vmul.f32 2.0, %v5106_v61  ;;  %v2341_v34 = vmul.f32 2.0, %v5112_v0 }
 0x26e   : > { %v2396_v44 = vsub.f32 %v2268_v10, %v2332_v45  ;;  %v2339_v45 = vmul.f32 2.0, %v5108_v62 }
 0x26f   : > { %v2015_v54 = vpop.permute.xlu1 %2014  ;;  %v2397_v8 = vsub.f32 %v2269_v24, %v2333_v48 }
 0x270   : > { %v2270_v56 = vadd.f32 %v5211_v36, %v2015_v54  ;;  %v2020_v21 = vpop.permute.xlu0 %2019  ;;  %v2491_v13 = vsel %vm2445_vm1, %v2396_v44, inf }
 0x271   : > { %v2271_v6 = vadd.f32 %v5211_v36, %v2020_v21  ;;  %2492 = vmin.xlane.f32.xlu1 %v2491_v13  ;;  %2489 = vmin.xlane.f32.xlu0 %v2488_v26  ;;  %v2494_v18 = vsel %vm2445_vm1, %v2397_v8, inf  ;;  %v2343_v13 = vmul.f32 2.0, %v5116_v2 }
 0x272   : > { %v2398_v33 = vsub.f32 %v2270_v56, %v2334_v43  ;;  %v2342_v56 = vmul.f32 2.0, %v5110_v63 }
 0x273   : > { %v2025_v55 = vpop.permute.xlu1 %2024  ;;  %v2399_v7 = vsub.f32 %v2271_v6, %v2335_v49 }
 0x274   : > { %v2272_v58 = vadd.f32 %v5211_v36, %v2025_v55  ;;  %v2030_v19 = vpop.permute.xlu0 %2029  ;;  %v2497_v41 = vsel %vm2445_vm1, %v2398_v33, inf  ;;  %v2344_v55 = vmul.f32 2.0, %v5114_v1 }
 0x275   : > { %v2273_v46 = vadd.f32 %v5211_v36, %v2030_v19  ;;  %2498 = vmin.xlane.f32.xlu1 %v2497_v41  ;;  %2495 = vmin.xlane.f32.xlu0 %v2494_v18  ;;  %v2500_v48 = vsel %vm2445_vm1, %v2399_v7, inf  ;;  %v5794_v7 = vmov 0.0  }
 0x276   : > { %v2400_v32 = vsub.f32 %v2272_v58, %v2336_v47  ;;  %4017 = vmatprep.mubr.msk.f32.mxu1 %vm4402_vm2, %v5794_v7 }
 0x277   : > { %v2035_v57 = vpop.permute.xlu1 %2034  ;;  %v2401_v10 = vsub.f32 %v2273_v46, %v2337_v4 }
 0x278   : > { %v2274_v60 = vadd.f32 %v5211_v36, %v2035_v57  ;;  %v2040_v31 = vpop.permute.xlu0 %2039  ;;  %v2503_v52 = vsel %vm2445_vm1, %v2400_v32, inf  ;;  %v5305_v57 = vmul.f32 2.0, %v5134_v50 }
 0x279   : > { %v2275_v3 = vadd.f32 %v5211_v36, %v2040_v31  ;;  %2504 = vmin.xlane.f32.xlu1 %v2503_v52  ;;  %2501 = vmin.xlane.f32.xlu0 %v2500_v48  ;;  %v2506_v44 = vsel %vm2445_vm1, %v2401_v10, inf  ;;  %v5311_v31 = vmul.f32 2.0, %v5140_v40 }
 0x27a   : > { %v2402_v25 = vsub.f32 %v2274_v60, %v2338_v29 }
 0x27b   : > { %v2045_v59 = vpop.permute.xlu1 %2044  ;;  %v2403_v54 = vsub.f32 %v2275_v3, %v2339_v45  ;;  %v5319_v3 = vmul.f32 2.0, %v5146_v23 }
 0x27c   : > { %v2276_v62 = vadd.f32 %v5211_v36, %v2045_v59  ;;  %v2050_v24 = vpop.permute.xlu0 %2049  ;;  %v2509_v43 = vsel %vm2445_vm1, %v2402_v25, inf  ;;  %v5329_v59 = vmul.f32 2.0, %v5152_v9 }
 0x27d   : > { %v2277_v49 = vadd.f32 %v5211_v36, %v2050_v24  ;;  %2510 = vmin.xlane.f32.xlu1 %v2509_v43  ;;  %2507 = vmin.xlane.f32.xlu0 %v2506_v44  ;;  %v2512_v6 = vsel %vm2445_vm1, %v2403_v54, inf  ;;  %v5338_v24 = vmul.f32 2.0, %v5158_v14  ;;  %v5340_v43 = vpop.f32.mrb[104].mxu0 }
 0x27e   : > { %v2404_v21 = vsub.f32 %v2276_v62, %v2340_v35  ;;  %v5346_v9 = vpop.f32.mrb[105].mxu0 }
 0x27f   : > { %v2055_v61 = vpop.permute.xlu1 %2054  ;;  %v2405_v47 = vsub.f32 %v2277_v49, %v2341_v34 }
 0x280   : > { %v2278_v0 = vadd.f32 %v5211_v36, %v2055_v61  ;;  %v2060_v26 = vpop.permute.xlu0 %2059  ;;  %v2515_v8 = vsel %vm2445_vm1, %v2404_v21, inf  ;;  %v5357_v21 = vpop.f32.mrb[106].mxu0 }
 0x281   : > { %v2279_v33 = vadd.f32 %v5211_v36, %v2060_v26  ;;  %2516 = vmin.xlane.f32.xlu1 %v2515_v8  ;;  %2513 = vmin.xlane.f32.xlu0 %v2512_v6  ;;  %v2518_v41 = vsel %vm2445_vm1, %v2405_v47, inf  ;;  %v5360_v61 = vpop.f32.mrb[107].mxu0  ;;  %v5832_v47 = vld [vmem:[#allocation24_spill] sm:$0xff] }
 0x282   : > { %v2406_v4 = vsub.f32 %v2278_v0, %v2342_v56  ;;  %v5371_v0 = vpop.f32.mrb[108].mxu0 }
 0x283   : > { %v2065_v63 = vpop.permute.xlu1 %2064  ;;  %v2407_v18 = vsub.f32 %v2279_v33, %v2343_v13  ;;  %v5374_v26 = vpop.f32.mrb[109].mxu0  ;;  %v5833_v33 = vld [vmem:[#allocation15_spill] sm:$0xff] }
 0x284   : > { %v2280_v58 = vadd.f32 %v5211_v36, %v2065_v63  ;;  %v5294_v19 = vpop.permute.xlu0 %2069  ;;  %v2521_v2 = vsel %vm2445_vm1, %v2406_v4, inf  ;;  %v5379_v8 = vpop.f32.mrb[110].mxu0  ;;  %v5835_v4 = vld [vmem:[#allocation17_spill] sm:$0xff]  ;;  %v5836_v63 = vld [vmem:[#allocation28_spill] sm:$0xff] }
 0x285   : > { %2522 = vmin.xlane.f32.xlu1 %v2521_v2  ;;  %2519 = vmin.xlane.f32.xlu0 %v2518_v41  ;;  %v2524_v32 = vsel %vm2445_vm1, %v2407_v18, inf  ;;  %v5839_v2 = vld [vmem:[#allocation20_spill] sm:$0xff]  ;;  %v5840_v41 = vld [vmem:[#allocation21_spill] sm:$0xff]  ;;  %v5841_v18 = vld [vmem:[#allocation22_spill] sm:$0xff] }
 0x286   : > { %v2408_v46 = vsub.f32 %v2280_v58, %v2344_v55  ;;  %v5834_v55 = vld [vmem:[#allocation26_spill] sm:$0xff]  ;;  %v5838_v58 = vld [vmem:[#allocation19_spill] sm:$0xff] }
 0x288   : > { %v5300_v1 = vpop.permute.xlu0 %2079  ;;  %v2527_v29 = vsel %vm2445_vm1, %v2408_v46, inf  ;;  %v5793_v46 = vlaneseq }
 0x289   : > { %2528 = vmin.xlane.f32.xlu1 %v2527_v29  ;;  %2525 = vmin.xlane.f32.xlu0 %v2524_v32  ;;  %v2281_v29 = vadd.f32 %v5211_v36, %v5294_v19  ;;  %v5842_v32 = vld [vmem:[#allocation6_spill] sm:$0xff] }
 0x28c   : > { %v2090_v45 = vpop.permute.xlu0 %2089 }
 0x28d   : > { %v5308_v60 = vadd.f32 %v5211_v36, %v2090_v45  ;;  %v2345_v45 = vmul.f32 2.0, %v5842_v32 }
 0x28f   : > { %v2413_v52 = vsub.f32 %v5308_v60, %v5305_v57  ;;  %v5867_v60 = vld [vmem:[#allocation11_spill] sm:$0xff] }
 0x290   : > { %v2100_v48 = vpop.permute.xlu0 %2099 }
 0x291   : > { %v5316_v10 = vadd.f32 %v5211_v36, %v2100_v48  ;;  %v5843_v48 = vld [vmem:[#allocation23_spill] sm:$0xff] }
 0x293   : > { %v2415_v50 = vsub.f32 %v5316_v10, %v5311_v31  ;;  %v5868_v10 = vld [vmem:[#allocation12_spill] sm:$0xff] }
 0x294   : > { %v2110_v35 = vpop.permute.xlu0 %2109 }
 0x295   : > { %v5324_v25 = vadd.f32 %v5211_v36, %v2110_v35  ;;  %v5425_v35 = vshrl.u32 %v5793_v46, 7 }
 0x297   : > { %v2417_v40 = vsub.f32 %v5324_v25, %v5319_v3  ;;  %v5869_v25 = vld [vmem:[#allocation13_spill] sm:$0xff] }
 0x298   : > { %v2120_v34 = vpop.permute.xlu0 %2119 }
 0x299   : > { %v5332_v62 = vadd.f32 %v5211_v36, %v2120_v34  ;;  %v2283_v34 = vadd.f32 %v5211_v36, %v5300_v1  ;;  %v2641_v1 = vadd.s32 16, %v5425_v35 }
 0x29a   : > { %2074 = vperm.xlu1 %4326, %v5118_v30   ;;  %v5352_v30 = vmul.f32 2.0, %v5164_v20 }
 0x29b   : > { %v2419_v23 = vsub.f32 %v5332_v62, %v5329_v59  ;;  %v5870_v62 = vld [vmem:[#allocation14_spill] sm:$0xff] }
 0x29c   : > { %v2130_v44 = vpop.permute.xlu0 %2129 }
 0x29d   : > { %v5343_v54 = vadd.f32 %v5211_v36, %v2130_v44  ;;  %v5844_v44 = vld [vmem:[#allocation8_spill] sm:$0xff] }
 0x29e   : > { %2084 = vperm.xlu1 %4326, %v5126_v5  }
 0x29f   : > { %v2421_v49 = vsub.f32 %v5343_v54, %v5338_v24  ;;  %2159 = vperm.xlu0 %4325, %v5174_v38   ;;  %v5366_v38 = vmul.f32 2.0, %v5170_v27  ;;  %v5382_v27 = vpop.f32.mrb[111].mxu0 }
 0x2a0   : > { %v2140_v14 = vpop.permute.xlu0 %2139 }
 0x2a1   : > { %v5355_v56 = vadd.f32 %v5211_v36, %v2140_v14  ;;  %v2347_v14 = vmul.f32 2.0, %v5844_v44 }
 0x2a2   : > { %2094 = vperm.xlu1 %4326, %v5132_v42  }
 0x2a3   : > { %v2423_v5 = vsub.f32 %v5355_v56, %v5352_v30  ;;  %2169 = vperm.xlu0 %4325, %v5178_v39   ;;  %v5385_v39 = vpop.f32.mrb[112].mxu0 }
 0x2a4   : > { %v2150_v20 = vpop.permute.xlu0 %2149 }
 0x2a5   : > { %v5369_v13 = vadd.f32 %v5211_v36, %v2150_v20  ;;  %v2409_v20 = vsub.f32 %v2281_v29, %v2345_v45  ;;  %v2643_v29 = vadd.s32 32, %v5425_v35  ;;  %v2644_v45 = vadd.s32 40, %v5425_v35 }
 0x2a6   : > { %2104 = vperm.xlu1 %4326, %v5138_v37   ;;  %v5388_v37 = vpop.f32.mrb[113].mxu0  ;;  %v2572_v24 = vsel %vm2445_vm1, %v2423_v5, inf }
 0x2a7   : > { %v2425_v42 = vsub.f32 %v5369_v13, %v5366_v38  ;;  %2179 = vperm.xlu0 %4325, %v5182_v53   ;;  %v5391_v6 = vpop.f32.mrb[114].mxu0  ;;  %v2530_v19 = vsel %vm2445_vm1, %v2409_v20, inf  ;;  %v2645_v20 = vadd.s32 48, %v5425_v35 }
 0x2a8   : > { %v5394_v53 = vpop.f32.mrb[115].mxu0 }
 0x2a9   : > { %v2578_v30 = vsel %vm2445_vm1, %v2425_v42, inf  ;;  %v2366_v42 = vmul.f32 2.0, %v5357_v21 }
 0x2aa   : > { %2114 = vperm.xlu1 %4326, %v5144_v22   ;;  %v5397_v22 = vpop.f32.mrb[116].mxu0 }
 0x2ab   : > { %2189 = vperm.xlu0 %4325, %v5186_v17   ;;  %v5400_v17 = vpop.f32.mrb[117].mxu0 }
 0x2ae   : > { %2124 = vperm.xlu1 %4326, %v5148_v51   ;;  %v5403_v51 = vpop.f32.mrb[118].mxu0 }
 0x2af   : > { %2199 = vperm.xlu0 %4325, %v5190_v16   ;;  %v5406_v16 = vpop.f32.mrb[119].mxu0 }
 0x2b2   : > { %2134 = vperm.xlu1 %4326, %v5154_v11   ;;  %v5409_v11 = vpop.f32.mrb[120].mxu0 }
 0x2b3   : > { %2209 = vperm.xlu0 %4325, %v5194_v12   ;;  %v5412_v12 = vpop.f32.mrb[121].mxu0 }
 0x2b6   : > { %2144 = vperm.xlu1 %4326, %v5160_v15   ;;  %v5837_v15 = vld [vmem:[#allocation18_spill] sm:$0xff] }
 0x2b7   : > { %2219 = vperm.xlu0 %4325, %v5832_v47   ;;  %v5845_v47 = vld [vmem:[#allocation25_spill] sm:$0xff] }
 0x2ba   : > { %2154 = vperm.xlu1 %4326, %v5833_v33   ;;  %v2640_v33 = vadd.s32 8, %v5425_v35 }
 0x2bb   : > { %2229 = vperm.xlu0 %4325, %v5834_v55   ;;  %v5433_v55 = vand.u32 127, %v5793_v46 }
 0x2bd   : > { %vm2657_vm3 = vcmp.eq.s32.totalorder %v5425_v35, %v5433_v55  ;;  %vm2658_vm4 = vcmp.eq.s32.totalorder %v2640_v33, %v5433_v55  ;;  %vm2659_vm6 = vcmp.eq.s32.totalorder %v2641_v1, %v5433_v55  ;;  %vm2661_vm9 = vcmp.eq.s32.totalorder %v2643_v29, %v5433_v55 }
 0x2be   : > { %2164 = vperm.xlu1 %4326, %v5835_v4   ;;  %v2411_v4 = vsub.f32 %v2283_v34, %v2347_v14  ;;  %vm5443_vm5 = vmpackc.low %vm2658_vm4, %vm2657_vm3  ;;  %vm2662_vm10 = vcmp.eq.s32.totalorder %v2644_v45, %v5433_v55  ;;  %vm2663_vm12 = vcmp.eq.s32.totalorder %v2645_v20, %v5433_v55  ;;  %v2650_v45 = vadd.s32 88, %v5425_v35 }
 0x2bf   : > { %2239 = vperm.xlu0 %4325, %v5836_v63   ;;  %v5846_v63 = vld [vmem:[#allocation27_spill] sm:$0xff]  ;;  %vm5465_vm11 = vmpackc.low %vm2662_vm10, %vm2661_vm9  ;;  %v2651_v20 = vadd.s32 96, %v5425_v35 }
 0x2c1   : > { %vm2669_vm9 = vcmp.eq.s32.totalorder %v2651_v20, %v5433_v55 }
 0x2c2   : > { %2174 = vperm.xlu1 %4326, %v5837_v15   ;;  %v2642_v15 = vadd.s32 24, %v5425_v35 }
 0x2c4   : > { %vm2660_vm7 = vcmp.eq.s32.totalorder %v2642_v15, %v5433_v55  ;;  %v2648_v15 = vadd.s32 72, %v5425_v35 }
 0x2c5   : > { %vm5454_vm8 = vmpackc.low %vm2660_vm7, %vm2659_vm6  ;;  %vm2668_vm6 = vcmp.eq.s32.totalorder %v2650_v45, %v5433_v55 }
 0x2c6   : > { %2184 = vperm.xlu1 %4326, %v5838_v58   ;;  %vm2666_vm0 = vcmp.eq.s32.totalorder %v2648_v15, %v5433_v55 }
 0x2ca   : > { %2194 = vperm.xlu1 %4326, %v5839_v2   ;;  %v2536_v2 = vsel %vm2445_vm1, %v2411_v4, inf }
 0x2ce   : > { %2204 = vperm.xlu1 %4326, %v5840_v41  }
 0x2d2   : > { %2214 = vperm.xlu1 %4326, %v5841_v18  }
 0x2d6   : > { %2224 = vperm.xlu1 %4326, %v5843_v48  }
 0x2da   : > { %2234 = vperm.xlu1 %4326, %v5845_v47   ;;  %v2646_v47 = vadd.s32 56, %v5425_v35 }
 0x2dc   : > { %vm2664_vm13 = vcmp.eq.s32.totalorder %v2646_v47, %v5433_v55 }
 0x2dd   : > { %vm5476_vm14 = vmpackc.low %vm2664_vm13, %vm2663_vm12 }
 0x2de   : > { %2244 = vperm.xlu1 %4326, %v5846_v63   ;;  %2531 = vmin.xlane.f32.xlu0 %v2530_v19  ;;  %v2451_v58 = vpop.xlane.xlu1 %2450  ;;  %v2647_v63 = vadd.s32 64, %v5425_v35 }
 0x2e0   : > { %vm2665_vm15 = vcmp.eq.s32.totalorder %v2647_v63, %v5433_v55 }
 0x2e1   : > { %vm5487_vm3 = vmpackc.low %vm2666_vm0, %vm2665_vm15 }
 0x2e2   : > { %v2448_v41 = vpop.xlane.xlu0 %2447  ;;  %2537 = vmin.xlane.f32.xlu0 %v2536_v2  ;;  %v2457_v48 = vpop.xlane.xlu1 %2456 }
 0x2e3   : > { %v4150_v32 = vpack.c.bf16 %v2451_v58, %v2448_v41 }
 0x2e5   : > { %4152 = vmatpush3.bf16.msk.msra.mxu1 %vm5443_vm5, %v4150_v32  ;;  %v2649_v32 = vadd.s32 80, %v5425_v35 }
 0x2e6   : > { %v2454_v34 = vpop.xlane.xlu0 %2453  ;;  %4153 = vmatprep.subr.bf16.mxu1 %v4401_v28 }
 0x2e7   : > { %v4154_v14 = vpack.c.bf16 %v2457_v48, %v2454_v34  ;;  %vm2667_vm4 = vcmp.eq.s32.totalorder %v2649_v32, %v5433_v55 }
 0x2e8   : > { %vm5498_vm7 = vmpackc.low %vm2668_vm6, %vm2667_vm4 }
 0x2e9   : > { %4156 = vmatpush3.bf16.msk.msra.mxu1 %vm5454_vm8, %v4154_v14 }
 0x2ea   : > { %v2463_v33 = vpop.xlane.xlu1 %2462  ;;  %v2460_v19 = vpop.xlane.xlu0 %2459  ;;  %4157 = vmatprep.subr.bf16.mxu1 %v4401_v28 }
 0x2eb   : > { %v4158_v1 = vpack.c.bf16 %v2463_v33, %v2460_v19  ;;  %v2652_v33 = vadd.s32 104, %v5425_v35 }
 0x2ed   : > { %4160 = vmatpush3.bf16.msk.msra.mxu1 %vm5465_vm11, %v4158_v1  ;;  %vm2670_vm10 = vcmp.eq.s32.totalorder %v2652_v33, %v5433_v55 }
 0x2ee   : > { %v2469_v58 = vpop.xlane.xlu1 %2468  ;;  %v2466_v2 = vpop.xlane.xlu0 %2465  ;;  %4161 = vmatprep.subr.bf16.mxu1 %v4401_v28  ;;  %vm5509_vm12 = vmpackc.low %vm2670_vm10, %vm2669_vm9 }
 0x2ef   : > { %v4162_v29 = vpack.c.bf16 %v2469_v58, %v2466_v2  ;;  %v2653_v58 = vadd.s32 112, %v5425_v35  ;;  %v2654_v2 = vadd.s32 120, %v5425_v35 }
 0x2f1   : > { %4164 = vmatpush3.bf16.msk.msra.mxu1 %vm5476_vm14, %v4162_v29  ;;  %vm2671_vm13 = vcmp.eq.s32.totalorder %v2653_v58, %v5433_v55  ;;  %vm2672_vm15 = vcmp.eq.s32.totalorder %v2654_v2, %v5433_v55 }
 0x2f2   : > { %v2475_v48 = vpop.xlane.xlu1 %2474  ;;  %v2472_v34 = vpop.xlane.xlu0 %2471  ;;  %4165 = vmatprep.subr.bf16.mxu1 %v4401_v28  ;;  %vm5518_vm0 = vmpackc.low %vm2672_vm15, %vm2671_vm13 }
 0x2f3   : > { %v4166_v47 = vpack.c.bf16 %v2475_v48, %v2472_v34 }
 0x2f5   : > { %4168 = vmatpush3.bf16.msk.msra.mxu1 %vm5487_vm3, %v4166_v47 }
 0x2f6   : > { %v2481_v19 = vpop.xlane.xlu1 %2480  ;;  %v2478_v63 = vpop.xlane.xlu0 %2477  ;;  %4169 = vmatprep.subr.bf16.mxu1 %v4401_v28 }
 0x2f7   : > { %v4170_v15 = vpack.c.bf16 %v2481_v19, %v2478_v63  ;;  %v5796_v63 = vmov 1.0  }
 0x2f9   : > { %4172 = vmatpush3.bf16.msk.msra.mxu1 %vm5498_vm7, %v4170_v15 }
 0x2fa   : > { %v2487_v29 = vpop.xlane.xlu1 %2486  ;;  %v2484_v32 = vpop.xlane.xlu0 %2483  ;;  %4173 = vmatprep.subr.bf16.mxu1 %v4401_v28 }
 0x2fb   : > { %v4174_v48 = vpack.c.bf16 %v2487_v29, %v2484_v32 }
 0x2fd   : > { %4176 = vmatpush3.bf16.msk.msra.mxu1 %vm5509_vm12, %v4174_v48 }
 0x2fe   : > { %v2493_v35 = vpop.xlane.xlu1 %2492  ;;  %v2490_v34 = vpop.xlane.xlu0 %2489  ;;  %4177 = vmatprep.subr.bf16.mxu1 %v4401_v28 }
 0x2ff   : > { %v4178_v47 = vpack.c.bf16 %v2493_v35, %v2490_v34 }
 0x301   : > { %4180 = vmatpush3.bf16.msk.msra.mxu1 %vm5518_vm0, %v4178_v47 }
 0x302   : > { %v2499_v33 = vpop.xlane.xlu1 %2498  ;;  %v2496_v19 = vpop.xlane.xlu0 %2495  ;;  %4181 = vmatprep.subr.bf16.mxu1 %v4401_v28 }
 0x303   : > { %v4182_v55 = vpack.c.bf16 %v2499_v33, %v2496_v19 }
 0x304   : > { %4018 = vmatmul.mubr.f32.vlgmr.msra.gmra.mrb[70].mxu1 %v5796_v63 }
 0x305   : > { %4184 = vmatpush3.bf16.msk.msra.mxu1 %vm5443_vm5, %v4182_v55  ;;  %4052 = vmatprep.mubr.msk.f32.mxu1 %vm4402_vm2, %v5794_v7 }
 0x306   : > { %v2505_v15 = vpop.xlane.xlu1 %2504  ;;  %v2502_v58 = vpop.xlane.xlu0 %2501  ;;  %4185 = vmatprep.subr.bf16.mxu1 %v4401_v28 }
 0x307   : > { %v4186_v2 = vpack.c.bf16 %v2505_v15, %v2502_v58 }
 0x309   : > { %4188 = vmatpush3.bf16.msk.msra.mxu1 %vm5454_vm8, %v4186_v2 }
 0x30a   : > { %v2511_v29 = vpop.xlane.xlu1 %2510  ;;  %v2508_v32 = vpop.xlane.xlu0 %2507  ;;  %4189 = vmatprep.subr.bf16.mxu1 %v4401_v28 }
 0x30b   : > { %v4190_v48 = vpack.c.bf16 %v2511_v29, %v2508_v32  ;;  %v5863_v32 = vld [vmem:[#allocation5_spill] sm:$0xff] }
 0x30d   : > { %4192 = vmatpush3.bf16.msk.msra.mxu1 %vm5465_vm11, %v4190_v48  ;;  %v2346_v48 = vmul.f32 2.0, %v5863_v32 }
 0x30e   : > { %v2517_v35 = vpop.xlane.xlu1 %2516  ;;  %v2514_v34 = vpop.xlane.xlu0 %2513  ;;  %4193 = vmatprep.subr.bf16.mxu1 %v4401_v28 }
 0x30f   : > { %v4194_v47 = vpack.c.bf16 %v2517_v35, %v2514_v34 }
 0x311   : > { %4196 = vmatpush3.bf16.msk.msra.mxu1 %vm5476_vm14, %v4194_v47 }
 0x312   : > { %v2523_v33 = vpop.xlane.xlu1 %2522  ;;  %v2520_v19 = vpop.xlane.xlu0 %2519  ;;  %4197 = vmatprep.subr.bf16.mxu1 %v4401_v28 }
 0x313   : > { %v4198_v55 = vpack.c.bf16 %v2523_v33, %v2520_v19  ;;  %v5864_v33 = vld [vmem:[#allocation7_spill] sm:$0xff] }
 0x314   : > { %v2348_v19 = vmul.f32 2.0, %v5864_v33 }
 0x315   : > { %4200 = vmatpush3.bf16.msk.msra.mxu1 %vm5487_vm3, %v4198_v55 }
 0x316   : > { %v2529_v15 = vpop.xlane.xlu1 %2528  ;;  %v2526_v58 = vpop.xlane.xlu0 %2525  ;;  %4201 = vmatprep.subr.bf16.mxu1 %v4401_v28 }
 0x317   : > { %v4202_v2 = vpack.c.bf16 %v2529_v15, %v2526_v58  ;;  %v5865_v15 = vld [vmem:[#allocation9_spill] sm:$0xff] }
 0x318   : > { %v2350_v58 = vmul.f32 2.0, %v5865_v15 }
 0x319   : > { %4204 = vmatpush3.bf16.msk.msra.mxu1 %vm5498_vm7, %v4202_v2 }
 0x31a   : > { %v2075_v29 = vpop.permute.xlu1 %2074  ;;  %4205 = vmatprep.subr.bf16.mxu1 %v4401_v28 }
 0x31b   : > { %v2282_v35 = vadd.f32 %v5211_v36, %v2075_v29  ;;  %v2542_v29 = vsel %vm2445_vm1, %v2413_v52, inf }
 0x31d   : > { %v2410_v34 = vsub.f32 %v2282_v35, %v2346_v48  ;;  %v5866_v35 = vld [vmem:[#allocation10_spill] sm:$0xff] }
 0x31e   : > { %v2085_v47 = vpop.permute.xlu1 %2084  ;;  %v2160_v48 = vpop.permute.xlu0 %2159 }
 0x31f   : > { %v2284_v55 = vadd.f32 %v5211_v36, %v2085_v47  ;;  %v2533_v46 = vsel %vm2445_vm1, %v2410_v34, inf  ;;  %v2352_v47 = vmul.f32 2.0, %v5866_v35  ;;  %v2560_v35 = vsel %vm2445_vm1, %v2419_v23, inf }
 0x320   : > { %2534 = vmin.xlane.f32.xlu1 %v2533_v46  ;;  %v2360_v23 = vmul.f32 2.0, %v5870_v62  ;;  %v2368_v62 = vmul.f32 2.0, %v5371_v0  ;;  %v2373_v0 = vmul.f32 2.0, %v5394_v53 }
 0x321   : > { %v2412_v7 = vsub.f32 %v2284_v55, %v2348_v19  ;;  %v2548_v19 = vsel %vm2445_vm1, %v2415_v50, inf  ;;  %v2356_v50 = vmul.f32 2.0, %v5868_v10 }
 0x322   : > { %v2095_v2 = vpop.permute.xlu1 %2094  ;;  %v2170_v55 = vpop.permute.xlu0 %2169 }
 0x323   : > { %v2286_v63 = vadd.f32 %v5211_v36, %v2095_v2  ;;  %v2539_v32 = vsel %vm2445_vm1, %v2412_v7, inf  ;;  %v2354_v7 = vmul.f32 2.0, %v5867_v60  ;;  %v2299_v60 = vadd.f32 %v5211_v36, %v2160_v48 }
 0x324   : > { %2543 = vmin.xlane.f32.xlu1 %v2542_v29  ;;  %2540 = vmin.xlane.f32.xlu0 %v2539_v32  ;;  %v2365_v48 = vmul.f32 2.0, %v5360_v61  ;;  %v2367_v61 = vmul.f32 2.0, %v5374_v26 }
 0x325   : > { %v2414_v34 = vsub.f32 %v2286_v63, %v2350_v58  ;;  %v2554_v63 = vsel %vm2445_vm1, %v2417_v40, inf  ;;  %v2358_v40 = vmul.f32 2.0, %v5869_v25 }
 0x326   : > { %v2105_v46 = vpop.permute.xlu1 %2104  ;;  %v2180_v3 = vpop.permute.xlu0 %2179 }
 0x327   : > { %v2288_v33 = vadd.f32 %v5211_v36, %v2105_v46  ;;  %v2545_v57 = vsel %vm2445_vm1, %v2414_v34, inf  ;;  %v2303_v25 = vadd.f32 %v5211_v36, %v2180_v3 }
 0x328   : > { %2549 = vmin.xlane.f32.xlu1 %v2548_v19  ;;  %2546 = vmin.xlane.f32.xlu0 %v2545_v57  ;;  %v2566_v19 = vsel %vm2445_vm1, %v2421_v49, inf  ;;  %v5871_v49 = vld [vmem:[#allocation16_spill] sm:$0xff] }
 0x329   : > { %v2416_v52 = vsub.f32 %v2288_v33, %v2352_v47 }
 0x32a   : > { %v2115_v15 = vpop.permute.xlu1 %2114 }
 0x32b   : > { %v2290_v2 = vadd.f32 %v5211_v36, %v2115_v15  ;;  %v2551_v31 = vsel %vm2445_vm1, %v2416_v52, inf  ;;  %v2190_v52 = vpop.permute.xlu0 %2189 }
 0x32c   : > { %2555 = vmin.xlane.f32.xlu1 %v2554_v63  ;;  %2552 = vmin.xlane.f32.xlu0 %v2551_v31  ;;  %v2362_v63 = vmul.f32 2.0, %v5871_v49 }
 0x32d   : > { %v2418_v58 = vsub.f32 %v2290_v2, %v2354_v7  ;;  %v2363_v7 = vmul.f32 2.0, %v5346_v9 }
 0x32e   : > { %v2125_v29 = vpop.permute.xlu1 %2124 }
 0x32f   : > { %v2292_v32 = vadd.f32 %v5211_v36, %v2125_v29  ;;  %v2557_v47 = vsel %vm2445_vm1, %v2418_v58, inf  ;;  %v2427_v10 = vsub.f32 %v2299_v60, %v2363_v7  ;;  %v2200_v5 = vpop.permute.xlu0 %2199  ;;  %v2364_v29 = vmul.f32 2.0, %v5340_v43 }
 0x330   : > { %2561 = vmin.xlane.f32.xlu1 %v2560_v35  ;;  %2558 = vmin.xlane.f32.xlu0 %v2557_v47  ;;  %v2305_v43 = vadd.f32 %v5211_v36, %v2190_v52 }
 0x331   : > { %v2420_v34 = vsub.f32 %v2292_v32, %v2356_v50  ;;  %v2301_v50 = vadd.f32 %v5211_v36, %v2170_v55  ;;  %v2584_v55 = vsel %vm2445_vm1, %v2427_v10, inf }
 0x332   : > { %v2135_v46 = vpop.permute.xlu1 %2134 }
 0x333   : > { %v2294_v33 = vadd.f32 %v5211_v36, %v2135_v46  ;;  %v2563_v59 = vsel %vm2445_vm1, %v2420_v34, inf  ;;  %v2429_v47 = vsub.f32 %v2301_v50, %v2365_v48  ;;  %v2369_v34 = vmul.f32 2.0, %v5382_v27  ;;  %v2210_v26 = vpop.permute.xlu0 %2209 }
 0x334   : > { %2567 = vmin.xlane.f32.xlu1 %v2566_v19  ;;  %2564 = vmin.xlane.f32.xlu0 %v2563_v59  ;;  %v2307_v27 = vadd.f32 %v5211_v36, %v2200_v5 }
 0x335   : > { %v2422_v57 = vsub.f32 %v2294_v33, %v2358_v40  ;;  %v2431_v33 = vsub.f32 %v2303_v25, %v2367_v61  ;;  %v2590_v3 = vsel %vm2445_vm1, %v2429_v47, inf  ;;  %v2433_v21 = vsub.f32 %v2305_v43, %v2369_v34  ;;  %v4335_v47 = vld [vmem:[%s5787_s4] ss:$0 sm:$0xff] }
 0x336   : > { %v2145_v15 = vpop.permute.xlu1 %2144  ;;  %v2374_v61 = vmul.f32 2.0, %v5391_v6  ;;  %v2376_v6 = vmul.f32 2.0, %v5397_v22  ;;  %v2379_v43 = vmul.f32 2.0, %v5412_v12 }
 0x337   : > { %v2296_v2 = vadd.f32 %v5211_v36, %v2145_v15  ;;  %v2569_v54 = vsel %vm2445_vm1, %v2422_v57, inf  ;;  %v2371_v57 = vmul.f32 2.0, %v5388_v37  ;;  %v2596_v52 = vsel %vm2445_vm1, %v2431_v33, inf }
 0x338   : > { %2573 = vmin.xlane.f32.xlu1 %v2572_v24  ;;  %2570 = vmin.xlane.f32.xlu0 %v2569_v54  ;;  %v2370_v24 = vmul.f32 2.0, %v5379_v8  ;;  %v2602_v37 = vsel %vm2445_vm1, %v2433_v21, inf  ;;  %v2375_v8 = vmul.f32 2.0, %v5400_v17 }
 0x339   : > { %v2424_v31 = vsub.f32 %v2296_v2, %v2360_v23  ;;  %v2220_v2 = vpop.permute.xlu0 %2219 }
 0x33a   : > { %v2155_v9 = vpop.permute.xlu1 %2154 }
 0x33b   : > { %v2298_v58 = vadd.f32 %v5211_v36, %v2155_v9  ;;  %v2575_v56 = vsel %vm2445_vm1, %v2424_v31, inf  ;;  %v2309_v31 = vadd.f32 %v5211_v36, %v2210_v26  ;;  %v2372_v9 = vmul.f32 2.0, %v5385_v39 }
 0x33c   : > { %2579 = vmin.xlane.f32.xlu1 %v2578_v30  ;;  %2576 = vmin.xlane.f32.xlu0 %v2575_v56 }
 0x33d   : > { %v2426_v32 = vsub.f32 %v2298_v58, %v2362_v63  ;;  %v2435_v63 = vsub.f32 %v2307_v27, %v2371_v57  ;;  %v2311_v58 = vadd.f32 %v5211_v36, %v2220_v2  ;;  %v2230_v53 = vpop.permute.xlu0 %2229  ;;  %v2437_v56 = vsub.f32 %v2309_v31, %v2373_v0 }
 0x33e   : > { %v2165_v35 = vpop.permute.xlu1 %2164  ;;  %v2313_v25 = vadd.f32 %v4335_v47, %v2230_v53  ;;  %v2380_v57 = vmul.f32 2.0, %v5409_v11 }
 0x33f   : > { %v2300_v38 = vadd.f32 %v5211_v36, %v2165_v35  ;;  %v2581_v13 = vsel %vm2445_vm1, %v2426_v32, inf  ;;  %v2439_v39 = vsub.f32 %v2311_v58, %v2375_v8 }
 0x340   : > { %2585 = vmin.xlane.f32.xlu1 %v2584_v55  ;;  %2582 = vmin.xlane.f32.xlu0 %v2581_v13  ;;  %v2377_v55 = vmul.f32 2.0, %v5406_v16 }
 0x341   : > { %v2428_v40 = vsub.f32 %v2300_v38, %v2364_v29  ;;  %v2608_v29 = vsel %vm2445_vm1, %v2435_v63, inf  ;;  %v2620_v34 = vsel %vm2445_vm1, %v2439_v39, inf }
 0x342   : > { %v2175_v46 = vpop.permute.xlu1 %2174  ;;  %v2441_v26 = vsub.f32 %v2313_v25, %v2377_v55 }
 0x343   : > { %v2302_v19 = vadd.f32 %v5211_v36, %v2175_v46  ;;  %v2587_v59 = vsel %vm2445_vm1, %v2428_v40, inf }
 0x344   : > { %2591 = vmin.xlane.f32.xlu1 %v2590_v3  ;;  %2588 = vmin.xlane.f32.xlu0 %v2587_v59  ;;  %v2378_v3 = vmul.f32 2.0, %v5403_v51  ;;  %v2626_v22 = vsel %vm2445_vm1, %v2441_v26, inf }
 0x345   : > { %v2430_v23 = vsub.f32 %v2302_v19, %v2366_v42  ;;  %v2240_v42 = vpop.permute.xlu0 %2239 }
 0x346   : > { %v2185_v60 = vpop.permute.xlu1 %2184  ;;  %v2315_v46 = vadd.f32 %v4335_v47, %v2240_v42 }
 0x347   : > { %v2304_v7 = vadd.f32 %v5211_v36, %v2185_v60  ;;  %v2593_v15 = vsel %vm2445_vm1, %v2430_v23, inf }
 0x348   : > { %2597 = vmin.xlane.f32.xlu1 %v2596_v52  ;;  %2594 = vmin.xlane.f32.xlu0 %v2593_v15  ;;  %v2443_v23 = vsub.f32 %v2315_v46, %v2379_v43 }
 0x349   : > { %v2432_v54 = vsub.f32 %v2304_v7, %v2368_v62 }
 0x34a   : > { %v2195_v49 = vpop.permute.xlu1 %2194  ;;  %v2632_v15 = vsel %vm2445_vm1, %v2443_v23, inf }
 0x34b   : > { %v2306_v10 = vadd.f32 %v5211_v36, %v2195_v49  ;;  %v2599_v48 = vsel %vm2445_vm1, %v2432_v54, inf }
 0x34c   : > { %2603 = vmin.xlane.f32.xlu1 %v2602_v37  ;;  %2600 = vmin.xlane.f32.xlu0 %v2599_v48 }
 0x34d   : > { %v2434_v50 = vsub.f32 %v2306_v10, %v2370_v24 }
 0x34e   : > { %v2205_v30 = vpop.permute.xlu1 %2204 }
 0x34f   : > { %v2308_v5 = vadd.f32 %v5211_v36, %v2205_v30  ;;  %v2605_v32 = vsel %vm2445_vm1, %v2434_v50, inf  ;;  %v2614_v36 = vsel %vm2445_vm1, %v2437_v56, inf  ;;  %v5873_v50 = vmov 0.0  }
 0x350   : > { %2609 = vmin.xlane.f32.xlu1 %v2608_v29  ;;  %2606 = vmin.xlane.f32.xlu0 %v2605_v32 }
 0x351   : > { %v2436_v35 = vsub.f32 %v2308_v5, %v2372_v9  ;;  %v5872_v9 = vmov 1.0  }
 0x352   : > { %v2215_v17 = vpop.permute.xlu1 %2214 }
 0x353   : > { %v2310_v38 = vadd.f32 %v4335_v47, %v2215_v17  ;;  %v2611_v13 = vsel %vm2445_vm1, %v2436_v35, inf }
 0x354   : > { %2615 = vmin.xlane.f32.xlu1 %v2614_v36  ;;  %2612 = vmin.xlane.f32.xlu0 %v2611_v13 }
 0x355   : > { %v2438_v40 = vsub.f32 %v2310_v38, %v2374_v61 }
 0x356   : > { %v2225_v16 = vpop.permute.xlu1 %2224 }
 0x357   : > { %v2312_v33 = vadd.f32 %v4335_v47, %v2225_v16  ;;  %v2617_v19 = vsel %vm2445_vm1, %v2438_v40, inf }
 0x358   : > { %2621 = vmin.xlane.f32.xlu1 %v2620_v34  ;;  %2618 = vmin.xlane.f32.xlu0 %v2617_v19 }
 0x359   : > { %v2440_v59 = vsub.f32 %v2312_v33, %v2376_v6 }
 0x35a   : > { %v2235_v62 = vpop.permute.xlu1 %2234 }
 0x35b   : > { %v2314_v21 = vadd.f32 %v4335_v47, %v2235_v62  ;;  %v2623_v12 = vsel %vm2445_vm1, %v2440_v59, inf }
 0x35c   : > { %2627 = vmin.xlane.f32.xlu1 %v2626_v22  ;;  %2624 = vmin.xlane.f32.xlu0 %v2623_v12 }
 0x35d   : > { %v2442_v60 = vsub.f32 %v2314_v21, %v2378_v3 }
 0x35e   : > { %v2245_v27 = vpop.permute.xlu1 %2244 }
 0x35f   : > { %v2316_v7 = vadd.f32 %v4335_v47, %v2245_v27  ;;  %v2629_v52 = vsel %vm2445_vm1, %v2442_v60, inf }
 0x360   : > { %2630 = vmin.xlane.f32.xlu0 %v2629_v52  ;;  %2633 = vmin.xlane.f32.xlu1 %v2632_v15 }
 0x361   : > { %v2444_v51 = vsub.f32 %v2316_v7, %v2380_v57 }
 0x363   : > { %v2635_v2 = vsel %vm2445_vm1, %v2444_v51, inf }
 0x364   : > { %2636 = vmin.xlane.f32.xlu0 %v2635_v2 }
 0x36b   : > { %v2532_v24 = vpop.xlane.xlu0 %2531 }
 0x36f   : > { %v2538_v54 = vpop.xlane.xlu0 %2537 }
 0x3ad   : > { %v2535_v0 = vpop.xlane.xlu1 %2534 }
 0x3ae   : > { %v4206_v49 = vpack.c.bf16 %v2535_v0, %v2532_v24 }
 0x3b0   : > { %4208 = vmatpush3.bf16.msk.msra.mxu1 %vm5509_vm12, %v4206_v49 }
 0x3b1   : > { %v2544_v11 = vpop.xlane.xlu1 %2543  ;;  %v2541_v37 = vpop.xlane.xlu0 %2540  ;;  %4209 = vmatprep.subr.bf16.mxu1 %v4401_v28 }
 0x3b2   : > { %v4210_v63 = vpack.c.bf16 %v2541_v37, %v2538_v54  ;;  %v5874_v54 = vlaneseq }
 0x3b4   : > { %4212 = vmatpush3.bf16.msk.msra.mxu1 %vm5518_vm0, %v4210_v63 }
 0x3b5   : > { %v2550_v31 = vpop.xlane.xlu1 %2549  ;;  %v2547_v10 = vpop.xlane.xlu0 %2546  ;;  %4213 = vmatprep.subr.bf16.mxu1 %v4401_v28 }
 0x3b6   : > { %v4214_v48 = vpack.c.bf16 %v2547_v10, %v2544_v11 }
 0x3b7   : > { %4053 = vmatmul.mubr.f32.vlgmr.msra.gmra.mrb[72].mxu1 %v5872_v9 }
 0x3b8   : > { %4216 = vmatpush3.bf16.msk.msra.mxu1 %vm5443_vm5, %v4214_v48  ;;  %4087 = vmatprep.mubr.msk.f32.mxu1 %vm4402_vm2, %v5873_v50 }
 0x3b9   : > { %v2556_v8 = vpop.xlane.xlu1 %2555  ;;  %v2553_v58 = vpop.xlane.xlu0 %2552  ;;  %4217 = vmatprep.subr.bf16.mxu1 %v4401_v28 }
 0x3ba   : > { %v4218_v53 = vpack.c.bf16 %v2553_v58, %v2550_v31 }
 0x3bc   : > { %4220 = vmatpush3.bf16.msk.msra.mxu1 %vm5454_vm8, %v4218_v53 }
 0x3bd   : > { %v2562_v30 = vpop.xlane.xlu1 %2561  ;;  %v2559_v56 = vpop.xlane.xlu0 %2558  ;;  %4221 = vmatprep.subr.bf16.mxu1 %v4401_v28 }
 0x3be   : > { %v4222_v5 = vpack.c.bf16 %v2559_v56, %v2556_v8 }
 0x3c0   : > { %4224 = vmatpush3.bf16.msk.msra.mxu1 %vm5465_vm11, %v4222_v5 }
 0x3c1   : > { %v2568_v29 = vpop.xlane.xlu1 %2567  ;;  %v2565_v32 = vpop.xlane.xlu0 %2564  ;;  %4225 = vmatprep.subr.bf16.mxu1 %v4401_v28 }
 0x3c2   : > { %v4226_v61 = vpack.c.bf16 %v2565_v32, %v2562_v30 }
 0x3c4   : > { %4228 = vmatpush3.bf16.msk.msra.mxu1 %vm5476_vm14, %v4226_v61 }
 0x3c5   : > { %v2574_v35 = vpop.xlane.xlu1 %2573  ;;  %v2571_v39 = vpop.xlane.xlu0 %2570  ;;  %4229 = vmatprep.subr.bf16.mxu1 %v4401_v28 }
 0x3c6   : > { %v4230_v55 = vpack.c.bf16 %v2571_v39, %v2568_v29 }
 0x3c8   : > { %4232 = vmatpush3.bf16.msk.msra.mxu1 %vm5487_vm3, %v4230_v55 }
 0x3c9   : > { %v2580_v17 = vpop.xlane.xlu1 %2579  ;;  %v2577_v47 = vpop.xlane.xlu0 %2576  ;;  %4233 = vmatprep.subr.bf16.mxu1 %v4401_v28 }
 0x3ca   : > { %v4234_v25 = vpack.c.bf16 %v2577_v47, %v2574_v35 }
 0x3cc   : > { %4236 = vmatpush3.bf16.msk.msra.mxu1 %vm5498_vm7, %v4234_v25 }
 0x3cd   : > { %v2586_v38 = vpop.xlane.xlu1 %2585  ;;  %v2583_v36 = vpop.xlane.xlu0 %2582  ;;  %4237 = vmatprep.subr.bf16.mxu1 %v4401_v28 }
 0x3ce   : > { %v4238_v13 = vpack.c.bf16 %v2583_v36, %v2580_v17 }
 0x3d0   : > { %4240 = vmatpush3.bf16.msk.msra.mxu1 %vm5509_vm12, %v4238_v13 }
 0x3d1   : > { %v2592_v42 = vpop.xlane.xlu1 %2591  ;;  %v2589_v6 = vpop.xlane.xlu0 %2588  ;;  %4241 = vmatprep.subr.bf16.mxu1 %v4401_v28 }
 0x3d2   : > { %v4242_v40 = vpack.c.bf16 %v2589_v6, %v2586_v38 }
 0x3d4   : > { %4244 = vmatpush3.bf16.msk.msra.mxu1 %vm5518_vm0, %v4242_v40 }
 0x3d5   : > { %v2598_v43 = vpop.xlane.xlu1 %2597  ;;  %v2595_v16 = vpop.xlane.xlu0 %2594  ;;  %4245 = vmatprep.subr.bf16.mxu1 %v4401_v28 }
 0x3d6   : > { %v4246_v34 = vpack.c.bf16 %v2595_v16, %v2592_v42 }
 0x3d7   : > { %4088 = vmatmul.mubr.f32.vlgmr.msra.gmra.mrb[74].mxu1 %v5872_v9  ;;  %v2755_v26 = vpop.f32.mrb[70].mxu1 }
 0x3d8   : > { %4248 = vmatpush3.bf16.msk.msra.mxu1 %vm5443_vm5, %v4246_v34  ;;  %4122 = vmatprep.mubr.msk.f32.mxu1 %vm4402_vm2, %v5873_v50  ;;  %v4019_v46 = vpop.f32.mrb[71].mxu1  ;;  %v2759_v3 = vmax.f32 %v2755_v26, 0.0  ;;  %vm5710_vm5 = vcmp.lt.s32.totalorder %v5874_v54, 128 }
 0x3d9   : > { %v2604_v33 = vpop.xlane.xlu1 %2603  ;;  %v2601_v19 = vpop.xlane.xlu0 %2600  ;;  %4249 = vmatprep.subr.bf16.mxu1 %v4401_v28 }
 0x3da   : > { %v4250_v59 = vpack.c.bf16 %v2601_v19, %v2598_v43  ;;  %4327 = vrsqrt.f32 %v2759_v3  ;;  %vm2762_vm1 = vcmp.eq.f32.partialorder %v2759_v3, inf  ;;  %v2765_v51 = vand.u32 2147483648, %v2759_v3 }
 0x3db   : > { %vm2764_vm2 = vcmp.eq.f32.partialorder %v2759_v3, 0.0 }
 0x3dc   : > { %4252 = vmatpush3.bf16.msk.msra.mxu1 %vm5454_vm8, %v4250_v59 }
 0x3dd   : > { %v2610_v62 = vpop.xlane.xlu1 %2609  ;;  %v2607_v23 = vpop.xlane.xlu0 %2606  ;;  %4253 = vmatprep.subr.bf16.mxu1 %v4401_v28 }
 0x3de   : > { %v4254_v18 = vpack.c.bf16 %v2607_v23, %v2604_v33 }
 0x3e0   : > { %4256 = vmatpush3.bf16.msk.msra.mxu1 %vm5465_vm11, %v4254_v18 }
 0x3e1   : > { %v2616_v21 = vpop.xlane.xlu1 %2615  ;;  %v2613_v22 = vpop.xlane.xlu0 %2612  ;;  %4257 = vmatprep.subr.bf16.mxu1 %v4401_v28 }
 0x3e2   : > { %v4258_v12 = vpack.c.bf16 %v2613_v22, %v2610_v62 }
 0x3e4   : > { %4260 = vmatpush3.bf16.msk.msra.mxu1 %vm5476_vm14, %v4258_v12  ;;  %v4328_v27 = vpop.eup %4327 }
 0x3e5   : > { %v2622_v44 = vpop.xlane.xlu1 %2621  ;;  %v2619_v57 = vpop.xlane.xlu0 %2618  ;;  %4261 = vmatprep.subr.bf16.mxu1 %v4401_v28  ;;  %v2761_v52 = vmul.f32 %v4328_v27, %v2759_v3 }
 0x3e6   : > { %v4262_v60 = vpack.c.bf16 %v2619_v57, %v2616_v21 }
 0x3e7   : > { %v2763_v14 = vsel %vm2762_vm1, %v2759_v3, %v2761_v52 }
 0x3e8   : > { %4264 = vmatpush3.bf16.msk.msra.mxu1 %vm5487_vm3, %v4262_v60  ;;  %v2766_v24 = vsel %vm2764_vm2, %v2765_v51, %v2763_v14 }
 0x3e9   : > { %v2625_v4 = vpop.xlane.xlu0 %2624  ;;  %4265 = vmatprep.subr.bf16.mxu1 %v4401_v28  ;;  %v2628_v15 = vpop.xlane.xlu1 %2627  ;;  %2771 = vst.msk [vmem:[%s5716_s8] sm:$0x1] %vm5710_vm5, %v2766_v24 }
 0x3ea   : > { %v4266_v7 = vpack.c.bf16 %v2625_v4, %v2622_v44 }
 0x3ec   : > { %4268 = vmatpush3.bf16.msk.msra.mxu1 %vm5498_vm7, %v4266_v7 }
 0x3ed   : > { %v2631_v41 = vpop.xlane.xlu0 %2630  ;;  %4269 = vmatprep.subr.bf16.mxu1 %v4401_v28  ;;  %v2634_v1 = vpop.xlane.xlu1 %2633 }
 0x3ee   : > { %v4270_v2 = vpack.c.bf16 %v2631_v41, %v2628_v15 }
 0x3f0   : > { %4272 = vmatpush3.bf16.msk.msra.mxu1 %vm5509_vm12, %v4270_v2 }
 0x3f1   : > { %v2637_v49 = vpop.xlane.xlu0 %2636  ;;  %4273 = vmatprep.subr.bf16.mxu1 %v4401_v28 }
 0x3f2   : > { %v4274_v11 = vpack.c.bf16 %v2637_v49, %v2634_v1 }
 0x3f4   : > { %4276 = vmatpush3.bf16.msk.msra.mxu1 %vm5518_vm0, %v4274_v11 }
 0x3f7   : > { %4123 = vmatmul.mubr.f32.vlgmr.msra.gmra.mrb[76].mxu1 %v5872_v9 }
 0x48a   : > { %v2854_v37 = vpop.f32.mrb[72].mxu1 }
 0x48b   : > { %v2858_v45 = vmax.f32 %v2854_v37, 0.0  ;;  %v4054_v63 = vpop.f32.mrb[73].mxu1 }
 0x48d   : > { %4329 = vrsqrt.f32 %v2858_v45  ;;  %vm2861_vm8 = vcmp.eq.f32.partialorder %v2858_v45, inf  ;;  %v2864_v48 = vand.u32 2147483648, %v2858_v45  ;;  %vm2863_vm11 = vcmp.eq.f32.partialorder %v2858_v45, 0.0 }
 0x497   : > { %v4330_v31 = vpop.eup %4329 }
 0x498   : > { %v2860_v10 = vmul.f32 %v4330_v31, %v2858_v45 }
 0x49a   : > { %v2862_v50 = vsel %vm2861_vm8, %v2858_v45, %v2860_v10 }
 0x49b   : > { %v2865_v8 = vsel %vm2863_vm11, %v2864_v48, %v2862_v50 }
 0x49c   : > { %2866 = vst.msk [vmem:[%s5716_s8 + $0x1] sm:$0x1] %vm5710_vm5, %v2865_v8 }
 0x4aa   : > { %v2949_v28 = vpop.f32.mrb[74].mxu1 }
 0x4ab   : > { %v2953_v20 = vmax.f32 %v2949_v28, 0.0  ;;  %v4089_v58 = vpop.f32.mrb[75].mxu1 }
 0x4ad   : > { %4331 = vrsqrt.f32 %v2953_v20  ;;  %vm2956_vm14 = vcmp.eq.f32.partialorder %v2953_v20, inf  ;;  %v2959_v30 = vand.u32 2147483648, %v2953_v20  ;;  %vm2958_vm3 = vcmp.eq.f32.partialorder %v2953_v20, 0.0 }
 0x4b7   : > { %v4332_v9 = vpop.eup %4331 }
 0x4b8   : > { %v2955_v53 = vmul.f32 %v4332_v9, %v2953_v20 }
 0x4ba   : > { %v2957_v56 = vsel %vm2956_vm14, %v2953_v20, %v2955_v53 }
 0x4bb   : > { %v2960_v5 = vsel %vm2958_vm3, %v2959_v30, %v2957_v56 }
 0x4bc   : > { %2961 = vst.msk [vmem:[%s5716_s8 + $0x2] sm:$0x1] %vm5710_vm5, %v2960_v5 }
 0x4ca   : > { %v3044_v29 = vpop.f32.mrb[76].mxu1 }
 0x4cb   : > { %v3048_v32 = vmax.f32 %v3044_v29, 0.0  ;;  %v4124_v61 = vpop.f32.mrb[77].mxu1 }
 0x4cd   : > { %4333 = vrsqrt.f32 %v3048_v32  ;;  %vm3051_vm4 = vcmp.eq.f32.partialorder %v3048_v32, inf  ;;  %v3054_v55 = vand.u32 2147483648, %v3048_v32  ;;  %vm3053_vm6 = vcmp.eq.f32.partialorder %v3048_v32, 0.0 }
 0x4d7   : > { %v4334_v35 = vpop.eup %4333 }
 0x4d8   : > { %v3050_v39 = vmul.f32 %v4334_v35, %v3048_v32 }
 0x4da   : > { %v3052_v17 = vsel %vm3051_vm4, %v3048_v32, %v3050_v39 }
 0x4db   : > { %v3055_v47 = vsel %vm3053_vm6, %v3054_v55, %v3052_v17 }
 0x4dc   : > { %3056 = vst.msk [vmem:[%s5716_s8 + $0x3] sm:$0x1] %vm5710_vm5, %v3055_v47 }
 0x4dd   : > { %4349 = shalt.err (!%p4346_p3)
}
 0x4de   : > { %s4350_s23 = scalar_lea.hbm %s5736_s13, 64  ;;  %s4354_s26 = scalar_lea.hbm %s5788_s5, 128 }
 0x4df   : > { %p4351_p4 = scmp.ne.s32.totalorder %s5736_s13, %s4350_s23  ;;  %p4355_p9 = scmp.lt.u32.totalorder %s5736_s13, %s5788_s5 }
 0x4e0   : > { %p4356_p10 = scmp.lt.u32.totalorder %s4354_s26, %s4350_s23  ;;  %p4358_p12 = scmp.lt.u32.totalorder %s4350_s23, %s5736_s13 }
 0x4e1   : > { %p4352_p7 = pnand %p4351_p4, %p4471_p5 }
 0x4e2   : > { %p4357_p11 = por %p4356_p10, %p4355_p9 }
 0x4e3   : > { %p4353_p8 = pneg %p4352_p7 }
 0x4e4   : > { %p4359_p13 = por %p4358_p12, %p4357_p11 }
 0x4e6   : > { %p4360_p0 = pnand %p4359_p13, %p4353_p8 }
 0x4e8   : > { %4363 = shalt.err (!%p4360_p0)
}
 0x4e9   : > { %4281 = dma.vmem_to_hbm [thread:$0]  (%p4471_p5), %s5738_s9, 64, %s5736_s13, %s3058_s14  }
 0x4ea PF: > { %p4287_p1 = scmp.ge.s32.totalorder %s4398_s21, 2  ;;  %s3084_s7 = sand.u32 1, %s4386_s18  }
 0x4eb   : > { %s3085_s8 = scalar_lea.sflag [#allocation3], %s3084_s7 }
 0x4ec   : > { %p4284_p2 = pnand %p4287_p1, %p4475_p6 }
 0x4ee   : > { %4381 = dma.done.wait (!%p4284_p2), %s3085_s8, 64  }
 0x4ef   : > { %4383 = vsyncadd (!%p4284_p2), %s3085_s8, 4294967232  ;;  %p15_p3 = scmp.ge.s32.totalorder %s4459_s24, 4   ;;  %s5877_s18 = smov %s4390_s19 }
 0x4f0   : > { %s5878_s19 = smov %s4394_s20  ;;  %s5879_s20 = smov %s4469_s27 }
 0x4f1   : > { %s5880_s21 = smov %s4459_s24  ;;  %17 = sbr.rel (!%p15_p3) target bundleno = 3 (0x3), region = 75 }
 0x4f8   :  { %3090 = vsyncpa [#allocation3], 1 }
 0x4f9   :  { %3092 = vsyncpa [#allocation3 + $0x1], 1 }

</bundles_post_ra>
